<compile_context>
chip_gen: v7x
topology: tpu7x:2x2x1
jax: 0.10.0
libtpu: 0.0.40
codegen_flags: <defaults>
</compile_context>

<pallas_src>
import math
import functools

import jax
import jax.numpy as jnp
from jax.experimental import pallas as pl
from jax.experimental.pallas import tpu as pltpu


def _round_up(x, m):
    return (x + m - 1) // m * m


# ----------------------------------------------------------------------------------------------
# Matmul kernel: C = act(A @ B + bias) [+ residual], bf16 inputs, fp32 accumulation.
# ----------------------------------------------------------------------------------------------

def _mm_kernel(*refs, act, has_res):
    if has_res:
        a_ref, b_ref, bias_ref, res_ref, o_ref, acc_ref = refs
    else:
        a_ref, b_ref, bias_ref, o_ref, acc_ref = refs
        res_ref = None

    @pl.when(pl.program_id(2) == 0)
    def _():
        acc_ref[...] = jnp.zeros_like(acc_ref)

    acc_ref[...] += jnp.dot(a_ref[...], b_ref[...], preferred_element_type=jnp.float32)

    @pl.when(pl.program_id(2) == pl.num_programs(2) - 1)
    def _():
        y = acc_ref[...] + bias_ref[...]
        if act == "silu":
            y = y * jax.nn.sigmoid(y)
        if has_res:
            y = y + res_ref[...]
        o_ref[...] = y.astype(o_ref.dtype)


def pallas_matmul(a, b, bias=None, act=None, res=None):
    """act(A @ B + bias) [+ res].  A:(M,K)  B:(K,N)  bias:(N,)  res:(M,N).  fp32 out."""
    M, K = a.shape
    K2, N = b.shape
    assert K == K2
    if a.dtype != jnp.bfloat16:
        a = a.astype(jnp.bfloat16)
    if b.dtype != jnp.bfloat16:
        b = b.astype(jnp.bfloat16)

    # --- tile selection: biggest aligned tiles that avoid padded copies whenever possible ---
    # M / N are only stored (masked stores are fine) -> use the real dim when it is small.
    if M <= 512:
        tm = M
    elif M % 512 == 0:
        tm = 512
    elif M % 256 == 0:
        tm = 256
    elif M % 128 == 0:
        tm = 128
    else:
        tm = 512
    Mp = _round_up(M, tm)

    if N <= 256:
        tn = N
    elif N % 256 == 0:
        tn = 256
    elif N % 128 == 0:
        tn = 128
    else:
        tn = 256
    Np = _round_up(N, tn)

    # K is the contraction dim -> keep it zero-padded to a lane multiple (never triggers at
    # production channel counts, cheap at toy sizes).
    Kp = _round_up(K, 128)
    if Kp <= 2048:
        tk = Kp
    else:
        tk = 512
        Kp = _round_up(K, tk)

    if (Mp, Kp) != (M, K):
        a = jnp.pad(a, ((0, Mp - M), (0, Kp - K)))
    if (Kp, Np) != (K, N):
        b = jnp.pad(b, ((0, Kp - K), (0, Np - N)))

    if bias is None:
        bias2 = jnp.zeros((1, Np), jnp.float32)
    else:
        bias2 = bias.astype(jnp.float32).reshape(1, N)
        if Np != N:
            bias2 = jnp.pad(bias2, ((0, 0), (0, Np - N)))

    fuse_res = (res is not None) and (Mp == M) and (Np == N)

    inputs = [a, b, bias2]
    in_specs = [
        pl.BlockSpec((tm, tk), lambda i, j, k: (i, k)),
        pl.BlockSpec((tk, tn), lambda i, j, k: (k, j)),
        pl.BlockSpec((1, tn), lambda i, j, k: (0, j)),
    ]
    if fuse_res:
        inputs.append(res.astype(jnp.float32))
        in_specs.append(pl.BlockSpec((tm, tn), lambda i, j, k: (i, j)))

    out = pl.pallas_call(
        functools.partial(_mm_kernel, act=act, has_res=fuse_res),
        grid=(Mp // tm, Np // tn, Kp // tk),
        in_specs=in_specs,
        out_specs=pl.BlockSpec((tm, tn), lambda i, j, k: (i, j)),
        out_shape=jax.ShapeDtypeStruct((Mp, Np), jnp.float32),
        scratch_shapes=[pltpu.VMEM((tm, tn), jnp.float32)],
        compiler_params=pltpu.CompilerParams(
            dimension_semantics=("parallel", "parallel", "arbitrary")),
    )(*inputs)

    if (Mp, Np) != (M, N):
        out = out[:M, :N]
    if (res is not None) and not fuse_res:
        out = out + res.astype(out.dtype)
    return out


# ----------------------------------------------------------------------------------------------
# GroupNorm kernel: all groups of one sample per grid step, single-pass stats, optional FiLM/SiLU.
# ----------------------------------------------------------------------------------------------

def _gn_kernel(*refs, eps, apply_silu, film, inv_count):
    if film:
        x_ref, g_ref, b_ref, gm_ref, gmt_ref, sc_ref, sh_ref, o_ref = refs
    else:
        x_ref, g_ref, b_ref, gm_ref, gmt_ref, o_ref = refs
    x = x_ref[0]                                          # (L, C) fp32
    s1 = jnp.sum(x, axis=0, keepdims=True)                # (1, C)
    s2 = jnp.sum(x * x, axis=0, keepdims=True)            # (1, C)
    gm = gm_ref[...]                                      # (C, G) one-hot group membership
    gmt = gmt_ref[...]                                    # (G, C)
    gsum = jnp.dot(s1, gm, preferred_element_type=jnp.float32)    # (1, G)
    gsq = jnp.dot(s2, gm, preferred_element_type=jnp.float32)     # (1, G)
    mean_g = gsum * inv_count
    var_g = jnp.maximum(gsq * inv_count - mean_g * mean_g, 0.0)
    rstd_g = jax.lax.rsqrt(var_g + eps)
    mean_c = jnp.dot(mean_g, gmt, preferred_element_type=jnp.float32)  # (1, C)
    rstd_c = jnp.dot(rstd_g, gmt, preferred_element_type=jnp.float32)  # (1, C)
    y = (x - mean_c) * (rstd_c * g_ref[0]) + b_ref[0]
    if film:
        y = y * (1.0 + sc_ref[0]) + sh_ref[0]
    if apply_silu:
        y = y * jax.nn.sigmoid(y)
    o_ref[0] = y


def group_norm(x, gamma, beta, scale=None, shift=None, silu=False, groups=32, eps=1e-5):
    """GroupNorm over (F,H,W, C/groups) per sample, optional (1+scale)*h+shift, optional SiLU."""
    B, F, H, W, C = x.shape
    G = groups
    Cg = C // G
    L = F * H * W
    xr = x.reshape(B, L, C)
    if xr.dtype != jnp.float32:
        xr = xr.astype(jnp.float32)
    gm = (jnp.arange(C)[:, None] // Cg == jnp.arange(G)[None, :]).astype(jnp.float32)  # (C,G)
    gmt = gm.T
    g2 = gamma.astype(jnp.float32).reshape(1, 1, C)
    b2 = beta.astype(jnp.float32).reshape(1, 1, C)

    film = scale is not None
    inputs = [xr, g2, b2, gm, gmt]
    in_specs = [
        pl.BlockSpec((1, L, C), lambda n: (n, 0, 0)),
        pl.BlockSpec((1, 1, C), lambda n: (0, 0, 0)),
        pl.BlockSpec((1, 1, C), lambda n: (0, 0, 0)),
        pl.BlockSpec((C, G), lambda n: (0, 0)),
        pl.BlockSpec((G, C), lambda n: (0, 0)),
    ]
    if film:
        inputs.append(scale.astype(jnp.float32).reshape(B, 1, C))
        inputs.append(shift.astype(jnp.float32).reshape(B, 1, C))
        in_specs.append(pl.BlockSpec((1, 1, C), lambda n: (n, 0, 0)))
        in_specs.append(pl.BlockSpec((1, 1, C), lambda n: (n, 0, 0)))

    out = pl.pallas_call(
        functools.partial(_gn_kernel, eps=eps, apply_silu=silu, film=film,
                          inv_count=1.0 / float(L * Cg)),
        grid=(B,),
        in_specs=in_specs,
        out_specs=pl.BlockSpec((1, L, C), lambda n: (n, 0, 0)),
        out_shape=jax.ShapeDtypeStruct((B, L, C), jnp.float32),
        compiler_params=pltpu.CompilerParams(dimension_semantics=("parallel",)),
    )(*inputs)
    return out.reshape(B, F, H, W, C)


# ----------------------------------------------------------------------------------------------
# Attention kernels
# ----------------------------------------------------------------------------------------------

def _attn_seq_kernel(q_ref, k_ref, v_ref, o_ref, *, scale, gt):
    # Several (batch*frame*head) sequences per grid step; 2D MXU dots per sequence.
    for g in range(gt):
        q = q_ref[g]                                            # (S, D) bf16
        k = k_ref[g]
        v = v_ref[g]
        s = jnp.einsum("qd,kd->qk", q, k, preferred_element_type=jnp.float32) * scale
        m = jnp.max(s, axis=-1, keepdims=True)
        p = jnp.exp(s - m)
        denom = jnp.sum(p, axis=-1, keepdims=True)
        o = jnp.einsum("qk,kd->qd", p.astype(v.dtype), v, preferred_element_type=jnp.float32)
        o_ref[g] = o * pl.reciprocal(denom, approx=True)


def pallas_attention_seq(q, k, v):
    """q,k,v: (G, S, D) -> softmax(q k^T / sqrt(D)) v.  Used when S is large (spatial attn)."""
    G, S, D = q.shape
    scale = 1.0 / math.sqrt(D)
    gt = 1
    for c in (8, 4, 2):
        if G % c == 0:
            gt = c
            break
    out = pl.pallas_call(
        functools.partial(_attn_seq_kernel, scale=scale, gt=gt),
        grid=(G // gt,),
        in_specs=[pl.BlockSpec((gt, S, D), lambda i: (i, 0, 0))] * 3,
        out_specs=pl.BlockSpec((gt, S, D), lambda i: (i, 0, 0)),
        out_shape=jax.ShapeDtypeStruct((G, S, D), jnp.float32),
        compiler_params=pltpu.CompilerParams(dimension_semantics=("parallel",)),
    )(q.astype(jnp.bfloat16), k.astype(jnp.bfloat16), v.astype(jnp.bfloat16))
    return out


def _attn_small_kernel(q_ref, k_ref, v_ref, o_ref, *, scale, S, D):
    # Tiny sequence length (temporal attention): data laid out (S*D, G) so the huge batch of
    # independent sequences sits dense on the 128-lane axis; everything is VPU/XLU work.
    q = q_ref[...].astype(jnp.float32)                          # (S*D, Gt)
    k = k_ref[...].astype(jnp.float32)
    v = v_ref[...].astype(jnp.float32)
    for i in range(S):
        qi = q[i * D:(i + 1) * D, :] * scale                    # (D, Gt)
        sj = [jnp.sum(qi * k[j * D:(j + 1) * D, :], axis=0, keepdims=True) for j in range(S)]
        m = sj[0]
        for j in range(1, S):
            m = jnp.maximum(m, sj[j])
        pj = [jnp.exp(sj[j] - m) for j in range(S)]
        denom = pj[0]
        for j in range(1, S):
            denom = denom + pj[j]
        acc = pj[0] * v[0:D, :]
        for j in range(1, S):
            acc = acc + pj[j] * v[j * D:(j + 1) * D, :]
        o_ref[i * D:(i + 1) * D, :] = acc * pl.reciprocal(denom, approx=True)


def pallas_attention_small(q, k, v, S, D):
    """q,k,v: (S*D, G) fp32 -> per-column attention over the tiny sequence S (temporal attn)."""
    R, G = q.shape
    scale = 1.0 / math.sqrt(D)
    Gp = _round_up(G, 128)
    if Gp != G:
        pad = ((0, 0), (0, Gp - G))
        q = jnp.pad(q, pad)
        k = jnp.pad(k, pad)
        v = jnp.pad(v, pad)
    gt = Gp
    for c in (1024, 512, 256, 128):
        if c < Gp and Gp % c == 0:
            gt = c
            break
    out = pl.pallas_call(
        functools.partial(_attn_small_kernel, scale=scale, S=S, D=D),
        grid=(Gp // gt,),
        in_specs=[pl.BlockSpec((R, gt), lambda i: (0, i))] * 3,
        out_specs=pl.BlockSpec((R, gt), lambda i: (0, i)),
        out_shape=jax.ShapeDtypeStruct((R, Gp), jnp.float32),
        compiler_params=pltpu.CompilerParams(dimension_semantics=("parallel",)),
    )(q.astype(jnp.float32), k.astype(jnp.float32), v.astype(jnp.float32))
    return out[:, :G] if Gp != G else out


# ----------------------------------------------------------------------------------------------
# Conv / layer helpers (channel-last glue, matmul on MXU via Pallas)
# ----------------------------------------------------------------------------------------------

def conv2d_3x3(x, w, b, res=None):
    """Per-frame 3x3 conv, stride 1, padding 1.  x:(B,F,H,W,C), w:(Cout,Cin,3,3)."""
    B, F, H, W, C = x.shape
    Cout = w.shape[0]
    xn = x.reshape(B * F, H, W, C).astype(jnp.bfloat16)
    xp = jnp.pad(xn, ((0, 0), (1, 1), (1, 1), (0, 0)))
    # TODO(synk): fold the 9 taps into the matmul K-reduction (index_map over (dy,dx)) instead of
    #             materializing the bf16 im2col tensor through HBM.
    cols = [xp[:, dy:dy + H, dx:dx + W, :] for dy in range(3) for dx in range(3)]
    patches = jnp.stack(cols, axis=-1)                    # (BF,H,W,C,9) -> K order (c, dy, dx)
    a = patches.reshape(B * F * H * W, C * 9)
    y = pallas_matmul(a, w.reshape(Cout, C * 9).T, b, res=res)
    return y.reshape(B, F, H, W, Cout)


def temporal_conv3(x, w, b, res=None):
    """Temporal conv over the frame axis, kernel 3, padding 1.  w:(Cout,Cin,3)."""
    B, F, H, W, C = x.shape
    Cout = w.shape[0]
    xp = jnp.pad(x.astype(jnp.bfloat16), ((0, 0), (1, 1), (0, 0), (0, 0), (0, 0)))
    cols = [xp[:, dt:dt + F] for dt in range(3)]
    patches = jnp.stack(cols, axis=-1)                    # (B,F,H,W,C,3) -> K order (c, dt)
    a = patches.reshape(B * F * H * W, C * 3)
    y = pallas_matmul(a, w.reshape(Cout, C * 3).T, b, res=res)
    return y.reshape(B, F, H, W, Cout)


def conv1x1(x, w, b):
    B, F, H, W, C = x.shape
    Cout = w.shape[0]
    y = pallas_matmul(x.reshape(-1, C), w.reshape(Cout, C).T, b)
    return y.reshape(B, F, H, W, Cout)


def pseudo3d_conv(p, x, temporal, res=None):
    """AdaptivePseudo3DConv: spatial 3x3 conv per frame, then temporal 1D conv if temporal."""
    if temporal:
        h = conv2d_3x3(x, p["sw"], p["sb"])
        return temporal_conv3(h, p["tw"], p["tb"], res=res)
    return conv2d_3x3(x, p["sw"], p["sb"], res=res)


def avg_pool2x(x):
    B, F, H, W, C = x.shape
    return x.reshape(B, F, H // 2, 2, W // 2, 2, C).mean(axis=(3, 5))


def upsample2x(x):
    return jnp.repeat(jnp.repeat(x, 2, axis=2), 2, axis=3)


def apply_mlp(p, v):
    """nn.Sequential(Linear, SiLU, Linear) — tiny (rows == batch), kept in plain XLA."""
    v = v.astype(jnp.float32)
    h = jax.nn.silu(v @ p["w1"].T + p["b1"])
    return h @ p["w2"].T + p["b2"]


# ----------------------------------------------------------------------------------------------
# Blocks
# ----------------------------------------------------------------------------------------------

def res_block(p, x, emb, temporal, sample=None):
    """AdaptiveSpatioTemporalResBlock (use_scale_shift_norm=True, skip_con=True)."""
    B = x.shape[0]
    Cout = p["cout"]
    if emb.ndim == 1:
        emb = emb[None, :]
    emb = jnp.broadcast_to(emb, (B, emb.shape[-1]))

    h = group_norm(x, p["n1_g"], p["n1_b"], silu=True)
    if sample == "down":
        h = avg_pool2x(h)
        xs = avg_pool2x(x)
    elif sample == "up":
        h = upsample2x(h)
        xs = upsample2x(x)
    else:
        xs = x
    h = pseudo3d_conv(p["conv1"], h, temporal)

    # tiny FiLM projection: keep in XLA (padding a B-row matmul through the MXU is wasteful)
    e = jax.nn.silu(emb.astype(jnp.float32))
    eo = e @ p["emb_w"].T + p["emb_b"]                    # (B, 2*Cout)
    scale, shift = eo[:, :Cout], eo[:, Cout:]

    h = group_norm(h, p["n2_g"], p["n2_b"], scale=scale, shift=shift, silu=True)
    # TODO(synk): nn.Dropout(0.1) treated as eval-mode identity (forward/inference semantics).
    if p["has_skip"]:
        skip = conv1x1(xs, p["skip_w"], p["skip_b"])
    else:
        skip = xs
    # residual fused into the epilogue of the last conv matmul
    return pseudo3d_conv(p["conv2"], h, temporal, res=skip.reshape(-1, Cout))


def attn_apply(x, p, heads, over):
    """Self-attention block: x + proj(attn(qkv(norm(x)))), over spatial (H*W) or temporal (F)."""
    B, F, H, W, C = x.shape
    dh = C // heads
    hn = group_norm(x, p["ng"], p["nb"], silu=False)
    xr = hn.reshape(-1, C)
    qkv = pallas_matmul(xr, p["qkv_w"].T, p["qkv_b"])     # (B*F*H*W, 3C)
    q, k, v = jnp.split(qkv, 3, axis=-1)

    if over == "spatial":
        S, G = H * W, B * F * heads

        def fwd(t):
            t = t.reshape(B, F, H * W, heads, dh).transpose(0, 1, 3, 2, 4)
            return t.reshape(G, S, dh)

        o = pallas_attention_seq(fwd(q), fwd(k), fwd(v))
        o = o.reshape(B, F, heads, S, dh).transpose(0, 1, 3, 2, 4).reshape(-1, C)
    else:
        S, G = F, B * H * W * heads

        def fwd(t):
            t = t.reshape(B, F, H, W, heads, dh).transpose(1, 5, 0, 2, 3, 4)
            return t.reshape(F * dh, G)

        o = pallas_attention_small(fwd(q), fwd(k), fwd(v), S=S, D=dh)
        o = o.reshape(F, dh, B, H, W, heads).transpose(2, 0, 3, 4, 5, 1).reshape(-1, C)

    # attention residual fused into the projection matmul epilogue
    proj = pallas_matmul(o, p["proj_w"].T, p["proj_b"], res=x.reshape(-1, C))
    return proj.reshape(B, F, H, W, C)


def apply_block(blk, x, emb, temporal):
    if blk["type"] == "res":
        return res_block(blk["p"], x, emb, temporal, blk.get("sample"))
    # attention res block: res -> spatial self-attn -> temporal self-attn
    p = blk["p"]
    x = res_block(p["res"], x, emb, temporal, None)
    x = attn_apply(x, p["sattn"], p["heads"], over="spatial")
    if temporal:
        x = attn_apply(x, p["tattn"], p["heads"], over="temporal")
    return x


# ----------------------------------------------------------------------------------------------
# Parameter construction (deterministic, synthetic)
# ----------------------------------------------------------------------------------------------

class RNG:
    def __init__(self, seed):
        self.key = jax.random.PRNGKey(seed)

    def next(self):
        self.key, sub = jax.random.split(self.key)
        return sub


def init_normal(rng, shape, scale=0.05):
    return scale * jax.random.normal(rng.next(), shape, jnp.float32)


def make_pseudo3d(rng, cin, cout, zero=False):
    if zero:  # zero_module(...)
        return dict(sw=jnp.zeros((cout, cin, 3, 3), jnp.float32), sb=jnp.zeros((cout,), jnp.float32),
                    tw=jnp.zeros((cout, cout, 3), jnp.float32), tb=jnp.zeros((cout,), jnp.float32))
    return dict(sw=init_normal(rng, (cout, cin, 3, 3)), sb=init_normal(rng, (cout,)),
                tw=init_normal(rng, (cout, cout, 3)), tb=init_normal(rng, (cout,)))


def make_resblock(rng, cin, cout, emb_size):
    p = dict(
        cout=cout,
        n1_g=jnp.ones((cin,), jnp.float32), n1_b=jnp.zeros((cin,), jnp.float32),
        conv1=make_pseudo3d(rng, cin, cout),
        emb_w=init_normal(rng, (2 * cout, emb_size)), emb_b=init_normal(rng, (2 * cout,)),
        n2_g=jnp.ones((cout,), jnp.float32), n2_b=jnp.zeros((cout,), jnp.float32),
        conv2=make_pseudo3d(rng, cout, cout),
        has_skip=(cin != cout),
    )
    if p["has_skip"]:
        p["skip_w"] = init_normal(rng, (cout, cin, 1, 1))
        p["skip_b"] = init_normal(rng, (cout,))
    return p


def make_attn(rng, c):
    return dict(ng=jnp.ones((c,), jnp.float32), nb=jnp.zeros((c,), jnp.float32),
                qkv_w=init_normal(rng, (3 * c, c)), qkv_b=init_normal(rng, (3 * c,)),
                proj_w=init_normal(rng, (c, c)), proj_b=init_normal(rng, (c,)))


def make_attn_resblock(rng, cin, cout, emb_size, heads):
    return dict(res=make_resblock(rng, cin, cout, emb_size),
                sattn=make_attn(rng, cout), tattn=make_attn(rng, cout), heads=heads)


def make_mlp(rng, din, dmid):
    return dict(w1=init_normal(rng, (dmid, din)), b1=init_normal(rng, (dmid,)),
                w2=init_normal(rng, (dmid, dmid)), b2=init_normal(rng, (dmid,)))


def build_unet(rng, cfg):
    bc = cfg["base_channels"]
    mults = cfg["mults"]
    rpb = cfg["res_blocks"]
    attn_at = cfg["attn_at"]
    heads_list = cfg["mha_heads"]
    emb = cfg["mid_emb"]

    P = dict(
        time_emb=make_mlp(rng, cfg["t_emb"], emb),
        img_emb=make_mlp(rng, cfg["i_emb"], emb),
        fps_emb=make_mlp(rng, cfg["f_emb"], emb),
        in_conv=make_pseudo3d(rng, cfg["in_ch"], bc),
        pre_out_g=jnp.ones((bc,), jnp.float32), pre_out_b=jnp.zeros((bc,), jnp.float32),
        out_conv=make_pseudo3d(rng, bc, cfg["out_ch"], zero=True),
    )

    down, up = [], []
    cur_attn = 0
    ch_out = mults[0] * bc
    down_factor = 1
    skips = []
    use_attn, cur_heads = False, None
    ci = ch_out

    for i, m in enumerate(mults):
        ch_in = ch_out
        ch_out = m * bc
        use_attn = down_factor in attn_at
        if use_attn:
            cur_heads = heads_list[cur_attn]
            cur_attn += 1
        blocks = []
        ci = ch_in
        for _ in range(rpb):
            if use_attn:
                blocks.append(dict(type="attnres", p=make_attn_resblock(rng, ci, ch_out, emb, cur_heads)))
            else:
                blocks.append(dict(type="res", p=make_resblock(rng, ci, ch_out, emb), sample=None))
            ci = ch_out
        skips.append(ch_out)
        down.append(blocks)
        if i < len(mults) - 1:
            down.append([dict(type="res", p=make_resblock(rng, ci, ch_out, emb), sample="down")])
            skips.append(ch_out)
            down_factor *= 2

    mid = []
    if use_attn:
        mid.append(dict(type="attnres", p=make_attn_resblock(rng, ci, ch_out, emb, cur_heads)))
    else:
        mid.append(dict(type="res", p=make_resblock(rng, ci, ch_out, emb), sample=None))
    mid.append(dict(type="res", p=make_resblock(rng, ci, ch_out, emb), sample=None))

    for i, m in reversed(list(enumerate(mults))):
        ch_in = ch_out
        ch_out = m * bc
        use_attn = down_factor in attn_at
        if use_attn:
            cur_attn -= 1
            cur_heads = heads_list[cur_attn]
        ci = ch_in + skips.pop()
        blocks = []
        for _ in range(rpb):
            if use_attn:
                blocks.append(dict(type="attnres", p=make_attn_resblock(rng, ci, ch_out, emb, cur_heads)))
            else:
                blocks.append(dict(type="res", p=make_resblock(rng, ci, ch_out, emb), sample=None))
            ci = ch_out
        up.append(blocks)
        if i > 0:
            added = skips.pop()
            up.append([dict(type="res", p=make_resblock(rng, ci + added, ch_out, emb), sample="up")])
            down_factor //= 2

    P["down"], P["mid"], P["up"] = down, mid, up
    return P


# ----------------------------------------------------------------------------------------------
# Forward
# ----------------------------------------------------------------------------------------------

def unet_forward(P, cfg, x, t_emb=None, i_emb=None, f_emb=None, temporal=True):
    zeros = jnp.zeros((cfg["mid_emb"],), jnp.float32)
    ie = zeros if i_emb is None else apply_mlp(P["img_emb"], i_emb)
    te = zeros if t_emb is None else apply_mlp(P["time_emb"], t_emb)
    fe = zeros if f_emb is None else apply_mlp(P["fps_emb"], f_emb)
    emb = ie + te + fe                                     # (B, mid_emb) via broadcasting

    # NCFHW -> channel-last once; channel-last everywhere inside the network.
    x = jnp.transpose(x, (0, 2, 3, 4, 1))                  # (B, F, H, W, C)
    x = pseudo3d_conv(P["in_conv"], x, temporal)

    outs = []
    for blocks in P["down"]:
        for blk in blocks:
            x = apply_block(blk, x, emb, temporal)
        outs.append(x)

    for blk in P["mid"]:
        x = apply_block(blk, x, emb, temporal)

    for blocks in P["up"]:
        xp = outs.pop()
        x = jnp.concatenate([xp, x], axis=-1)              # torch.cat((xp, x), dim=1)
        for blk in blocks:
            x = apply_block(blk, x, emb, temporal)

    x = group_norm(x, P["pre_out_g"], P["pre_out_b"], silu=True)   # GroupNorm(32, base) + SiLU
    x = pseudo3d_conv(P["out_conv"], x, temporal)                  # zero_module'd out conv
    return jnp.transpose(x, (0, 4, 1, 2, 3))                       # back to NCFHW


# ----------------------------------------------------------------------------------------------
# Main
# ----------------------------------------------------------------------------------------------

if __name__ == "__main__":
    cfg = dict(
        base_channels=32,
        mults=(1, 2),
        res_blocks=1,
        attn_at=(2,),
        mha_heads=(4, 4, 4),
        in_ch=3,
        out_ch=6,
        i_emb=32,
        t_emb=32,
        f_emb=32,
        mid_emb=64,
    )

    key = jax.random.PRNGKey(0)
    kx, kt = jax.random.split(key)
    B, F, H, W = 2, 4, 16, 16
    x = jax.random.normal(kx, (B, cfg["in_ch"], F, H, W), jnp.float32)
    t_emb = jax.random.normal(kt, (B, cfg["t_emb"]), jnp.float32)

    rng = RNG(0)
    params = build_unet(rng, cfg)

    out = unet_forward(params, cfg, x, t_emb=t_emb, i_emb=None, f_emb=None, temporal=True)
    out = jax.block_until_ready(out)

    assert out.shape == (B, cfg["out_ch"], F, H, W), out.shape
    assert jnp.all(jnp.isfinite(out))
    print("KERNEL_OK")
</pallas_src>

<mosaic_0001>
module attributes {stable_mosaic.version = 11 : i64} {
  func.func @_mm_kernel(%arg0: i32, %arg1: i32, %arg2: i32, %arg3: memref<512x128xbf16, #tpu.memory_space<vmem>>, %arg4: memref<128x32xbf16, #tpu.memory_space<vmem>>, %arg5: memref<1x32xf32, #tpu.memory_space<vmem>>, %arg6: memref<512x32xf32, #tpu.memory_space<vmem>>, %arg7: memref<512x32xf32, #tpu.memory_space<vmem>>) attributes {dimension_semantics = [#tpu.dimension_semantics<parallel>, #tpu.dimension_semantics<parallel>, #tpu.dimension_semantics<arbitrary>], iteration_bounds = array<i64: 4, 1, 1>, scalar_prefetch = 0 : i64, scratch_operands = 1 : i64, tpu.core_type = #tpu.core_type<tc>, window_params = [{transform_indices = @transform_0, window_bounds = array<i64: 512, 128>}, {transform_indices = @transform_1, window_bounds = array<i64: 128, 32>}, {transform_indices = @transform_2, window_bounds = array<i64: 1, 32>}, {transform_indices = @transform_3, window_bounds = array<i64: 512, 32>}]} {
    %c0_i32 = arith.constant 0 : i32
    %0 = arith.cmpi eq, %arg2, %c0_i32 : i32
    %1 = arith.extui %0 : i1 to i32
    %c0_i32_0 = arith.constant 0 : i32
    %2 = arith.cmpi ne, %1, %c0_i32_0 : i32
    scf.if %2 {
      %cst_10 = arith.constant 0.000000e+00 : f32
      %12 = vector.broadcast %cst_10 : f32 to vector<512x32xf32>
      %c0_11 = arith.constant 0 : index
      %c0_12 = arith.constant 0 : index
      %13 = vector.load %arg7[%c0_11, %c0_12] : memref<512x32xf32, #tpu.memory_space<vmem>>, vector<512x32xf32>
      tpu.vector_store %arg7[%c0_11, %c0_12], %12 {strides = array<i32>} : memref<512x32xf32, #tpu.memory_space<vmem>>, vector<512x32xf32>,
    } else {
    }
    %c0 = arith.constant 0 : index
    %c0_1 = arith.constant 0 : index
    %3 = vector.load %arg7[%c0, %c0_1] : memref<512x32xf32, #tpu.memory_space<vmem>>, vector<512x32xf32>
    %c0_2 = arith.constant 0 : index
    %c0_3 = arith.constant 0 : index
    %4 = vector.load %arg3[%c0_2, %c0_3] : memref<512x128xbf16, #tpu.memory_space<vmem>>, vector<512x128xbf16>
    %c0_4 = arith.constant 0 : index
    %c0_5 = arith.constant 0 : index
    %5 = vector.load %arg4[%c0_4, %c0_5] : memref<128x32xbf16, #tpu.memory_space<vmem>>, vector<128x32xbf16>
    %cst = arith.constant dense<0.000000e+00> : vector<512x32xf32>
    %6 = tpu.matmul %4, %5, %cst {dimension_numbers = #tpu.dot_dimension_numbers<[1], [0], [0], [1], [0, 0, 1, 1], [], []>} : vector<512x128xbf16>, vector<128x32xbf16>, vector<512x32xf32> -> vector<512x32xf32>
    %7 = arith.addf %3, %6 : vector<512x32xf32>
    %c0_6 = arith.constant 0 : index
    %c0_7 = arith.constant 0 : index
    %8 = vector.load %arg7[%c0_6, %c0_7] : memref<512x32xf32, #tpu.memory_space<vmem>>, vector<512x32xf32>
    tpu.vector_store %arg7[%c0_6, %c0_7], %7 {strides = array<i32>} : memref<512x32xf32, #tpu.memory_space<vmem>>, vector<512x32xf32>,
    %c0_i32_8 = arith.constant 0 : i32
    %9 = arith.cmpi eq, %arg2, %c0_i32_8 : i32
    %10 = arith.extui %9 : i1 to i32
    %c0_i32_9 = arith.constant 0 : i32
    %11 = arith.cmpi ne, %10, %c0_i32_9 : i32
    scf.if %11 {
      %c0_10 = arith.constant 0 : index
      %c0_11 = arith.constant 0 : index
      %12 = vector.load %arg7[%c0_10, %c0_11] : memref<512x32xf32, #tpu.memory_space<vmem>>, vector<512x32xf32>
      %c0_12 = arith.constant 0 : index
      %c0_13 = arith.constant 0 : index
      %13 = vector.load %arg5[%c0_12, %c0_13] : memref<1x32xf32, #tpu.memory_space<vmem>>, vector<1x32xf32>
      %14 = vector.broadcast %13 : vector<1x32xf32> to vector<512x32xf32>
      %15 = arith.addf %12, %14 : vector<512x32xf32>
      %c0_14 = arith.constant 0 : index
      %c0_15 = arith.constant 0 : index
      %16 = vector.load %arg6[%c0_14, %c0_15] : memref<512x32xf32, #tpu.memory_space<vmem>>, vector<512x32xf32>
      tpu.vector_store %arg6[%c0_14, %c0_15], %15 {strides = array<i32>} : memref<512x32xf32, #tpu.memory_space<vmem>>, vector<512x32xf32>,
    } else {
    }
    return
  }
  func.func @transform_0(%arg0: i32, %arg1: i32, %arg2: i32) -> (i32, i32) {
    %c0_i32 = arith.constant 0 : i32
    return %arg0, %arg2 : i32, i32
  }
  func.func @transform_1(%arg0: i32, %arg1: i32, %arg2: i32) -> (i32, i32) {
    %c0_i32 = arith.constant 0 : i32
    return %arg2, %arg1 : i32, i32
  }
  func.func @transform_2(%arg0: i32, %arg1: i32, %arg2: i32) -> (i32, i32) {
    %c0_i32 = arith.constant 0 : i32
    %c0_i32_0 = arith.constant 0 : i32
    return %c0_i32, %arg1 : i32, i32
  }
  func.func @transform_3(%arg0: i32, %arg1: i32, %arg2: i32) -> (i32, i32) {
    %c0_i32 = arith.constant 0 : i32
    return %arg0, %arg1 : i32, i32
  }
}

</mosaic_0001>

<bundles_post_ra>
// kernel: tpu_custom_call.1
= control target key start
LH: loop header
LB: loop body
LE: loop exit
PB: predicated region body
PF: predicated region fallthrough
CT: control target
= control target key end

     0   :  { %8 = vsyncpa [#allocation4], 0  ;;  %s2443_s0 = inlined_call_operand.hbm [shape: bf16[2048,128], index: 0, kind: input, shape index: {}]   ;;  %s2444_s1 = inlined_call_operand.vmem [shape: bf16[128,32], index: 1, kind: input, shape index: {}]   ;;  %s2445_s2 = inlined_call_operand.vmem [shape: f32[1,32], index: 2, kind: input, shape index: {}]   ;;  %s2446_s3 = inlined_call_operand.vmem [shape: f32[2048,32], index: 3, kind: output, shape index: {}]  }
   0x1   :  { %10 = vsyncpa [#allocation4 + $0x1], 0  ;;  %s1862_s12 = smov 0   ;;  %s1864_s13 = smov 0  }
   0x2   :  { %s1866_s14 = smov 0   ;;  %s1868_s15 = smov 0  }
   0x3   :  { %s1870_s16 = smov 0   ;;  %s1872_s17 = smov 0  }
   0x4 LB: > { %s1465_s18 = sadd.s32 4294967295, %s1836_s17   ;;  %s35_s19 = sadd.s32 1, %s1832_s16  ;;  %s1836_s17 = sphi %s1872_s17, %s16_s17   ;;  %s1832_s16 = sphi %s1870_s16, %s2455_s16   ;;  %s1828_s15 = sphi %s1868_s15, %s2454_s15   ;;  %s1824_s14 = sphi %s1866_s14, %s2453_s14   ;;  %s1820_s13 = sphi %s1864_s13, %s2452_s13   ;;  %s1816_s12 = sphi %s1862_s12, %s2451_s12  }
   0x5   : > { %p37_p0 = scmp.ge.s32.totalorder %s35_s19, 4  ;;  %s44_s20 = sadd.s32 1, %s1824_s14 }
   0x6   : > { %p51_p1 = scmp.ne.s32.totalorder %s1824_s14, %s1820_s13  ;;  %p52_p2 = scmp.eq.s32.totalorder %s1836_s17, 0 }
   0x7   : > { %s2457_s19 = smov (%p37_p0, %s35_s19), 0  ;;  %p57_p4 = scmp.ne.s32.totalorder %s1820_s13, %s1816_s12 }
   0x8   : > { %p1898_p3 = por %p52_p2, %p51_p1  ;;  %s39_s22 = ssub.s32 %s1832_s16, %s2457_s19 }
   0x9   : > { %p58_p5 = scmp.eq.s32.totalorder %s1465_s18, 0  ;;  %p42_p6 = scmp.eq.s32.totalorder %s39_s22, 0 }
   0xa   : > { %p1664_p8 = scmp.lt.s32.totalorder %s1836_s17, 4  ;;  %s181_s25 = sand.u32 1, %s1824_s14  }
   0xb   : > { %p1905_p7 = por %p58_p5, %p57_p4  ;;  %s1521_s26 = sshll.u32 %s1832_s16, 12 }
   0xc   : > { %s1911_s24 = scalar_select %p42_p6, %s1824_s14, %s44_s20  }
   0xd   : > { %s1471_s27 = sshll.u32 %s181_s25, 8  ;;  %s1918_s30 = scalar_lea.hbm %s2443_s0, %s1521_s26 }
   0xe   : > { %s185_s4 = scalar_lea.vmem [#allocation3], %s1471_s27  ;;  %p1922_p9 = pnand %p1664_p8, %p1898_p3 }
   0xf   : > { %s193_s5 = sshll.u32 %s185_s4, 4  ;;  %s1928_s7 = scalar_lea.sflag [#allocation4], %s181_s25  ;;  %s1926_s5 = int_to_ptr.vmem [resolvable:$true] %s193_s5 }
  0x10   : > { %s1756_s8 = scalar_lea.hbm %s1918_s30, 4096  ;;  %p1758_p11 = pneg %p1922_p9 }
  0x11   : > { %p1757_p10 = scmp.ne.s32.totalorder %s1918_s30, %s1756_s8  ;;  %s1761_s11 = scalar_lea.hbm %s2443_s0, 16384 }
  0x12   : > { %p1762_p0 = scmp.lt.u32.totalorder %s1918_s30, %s2443_s0  ;;  %p1763_p1 = scmp.lt.u32.totalorder %s1761_s11, %s1756_s8 }
  0x13   : > { %p1759_p12 = pnand %p1758_p11, %p1757_p10  ;;  %p1765_p3 = scmp.lt.u32.totalorder %s1756_s8, %s1918_s30 }
  0x14   : > { %p1764_p2 = por %p1763_p1, %p1762_p0 }
  0x15   : > { %p1760_p13 = pneg %p1759_p12 }
  0x16   : > { %p1766_p4 = por %p1765_p3, %p1764_p2 }
  0x18   : > { %p1767_p5 = pnand %p1766_p4, %p1760_p13 }
  0x1a   : > { %1770 = shalt.err (!%p1767_p5)
}
  0x1b   : > { %s1771_s20 = scalar_lea.vmem %s1926_s5, 4096  ;;  %s1838_s21 = smov [#allocation3]  }
  0x1c   : > { %p1772_p6 = scmp.ne.s32.totalorder %s1926_s5, %s1771_s20  ;;  %s1776_s22 = sshll.u32 %s1838_s21, 4  ;;  %s1777_s22 = int_to_ptr.vmem [resolvable:$false] %s1776_s22 }
  0x1d   : > { %s1778_s25 = scalar_lea.vmem %s1777_s22, 8192  ;;  %p1779_p12 = scmp.lt.s32.totalorder %s1926_s5, %s1777_s22 }
  0x1e   : > { %p1774_p8 = pnand %p1772_p6, %p1758_p11  ;;  %p1780_p0 = scmp.lt.s32.totalorder %s1778_s25, %s1771_s20 }
  0x20   : > { %p1775_p10 = pneg %p1774_p8  ;;  %p1781_p1 = por %p1780_p0, %p1779_p12 }
  0x22   : > { %p1782_p2 = pnand %p1781_p1, %p1775_p10 }
  0x24   : > { %1785 = shalt.err (!%p1782_p2)
}
  0x25   : > { %s1839_s26 = smov 64   ;;  %s1840_s27 = smov 4  }
  0x26   : > { %1663 = dma.hbm_to_vmem [thread:$0]  (!%p1922_p9), %s1918_s30, 4096, %s1926_s5, %s1928_s7, %s1839_s26, %s1839_s26, %s1840_s27  }
  0x27   : > { %p1474_p11 = scmp.ge.s32.totalorder %s1836_s17, 1  ;;  %p201_p13 = scmp.lt.s32.totalorder %s1836_s17, 5 }
  0x29   : > { %p202_p3 = pnand %p1474_p11, %p201_p13 }
  0x2a   : > { %s207_s28 = sand.u32 (!%p202_p3), 1, %s1820_s13  }
  0x2b   : > { %205 = sbr.rel (%p202_p3) target bundleno = 371 (0x173), region = 32  ;;  %s1475_s29 = sshll.u32 (!%p202_p3), %s207_s28, 8 }
  0x2c   : > { %s208_s4 = scalar_lea.sflag (!%p202_p3), [#allocation4], %s207_s28  ;;  %s1959_s8 = scalar_lea.vmem (!%p202_p3), [#allocation3], %s1475_s29 }
  0x32   : > { %1811 = dma.done.wait (%p1905_p7), %s208_s4, 4096  }
  0x33   : > { %1813 = vsyncadd (%p1905_p7), %s208_s4, 4294963200  ;;  %vm275_vm0 = vcmask 261120   ;;  %v1841_v0 = vmov 0.0   ;;  %v1716_v1 = vld [vmem:[%s2444_s1] sm:$0xff]   ;;  %v1717_v2 = vld [vmem:[%s2444_s1 + $0x8] sm:$0xff]   ;;  %s1476_s28 = sshll.u32 %s1828_s15, 6 }
  0x34   : > { %278 = vst.msk [vmem:[#allocation2 + $0x10] sm:$0xff] %vm275_vm0, %v1841_v0  ;;  %276 = vst.msk [vmem:[#allocation2] sm:$0xff] %vm275_vm0, %v1841_v0  ;;  %1562 = vmatprep.subr.bf16.mxu0 %v1716_v1  ;;  %1642 = vmatprep.subr.bf16.mxu1 %v1716_v1  ;;  %v1718_v3 = vld [vmem:[%s2444_s1 + $0x10] sm:$0xff]   ;;  %v1719_v4 = vld [vmem:[%s2444_s1 + $0x18] sm:$0xff]   ;;  %p2150_p7 = scmp.lt.s32.totalorder %s1476_s28, 255 }
  0x35   : > { %277 = vst.msk [vmem:[#allocation2 + $0x8] sm:$0xff] %vm275_vm0, %v1841_v0  ;;  %279 = vst.msk [vmem:[#allocation2 + $0x18] sm:$0xff] %vm275_vm0, %v1841_v0  ;;  %1563 = vmatpush3.bf16.msra.mxu0 %v1716_v1  ;;  %1650 = vmatpush3.bf16.msra.mxu1 %v1716_v1  ;;  %v1724_v5 = vld [vmem:[%s1959_s8] sm:$0xff]   ;;  %v1721_v8 = vld [vmem:[%s2444_s1 + $0x28] sm:$0xff]  }
  0x36   : > { %280 = vst.msk [vmem:[#allocation2 + $0x20] sm:$0xff] %vm275_vm0, %v1841_v0  ;;  %281 = vst.msk [vmem:[#allocation2 + $0x28] sm:$0xff] %vm275_vm0, %v1841_v0  ;;  %1564 = vmatprep.subr.bf16.mxu0 %v1717_v2  ;;  %1643 = vmatprep.subr.bf16.mxu1 %v1717_v2  ;;  %v1725_v6 = vld [vmem:[%s1959_s8 + $0x80] sm:$0xff]   ;;  %v1722_v9 = vld [vmem:[%s2444_s1 + $0x30] sm:$0xff]   ;;  %s2459_s28 = smov (!%p2150_p7, %s1476_s28), 255 }
  0x37   : > { %282 = vst.msk [vmem:[#allocation2 + $0x30] sm:$0xff] %vm275_vm0, %v1841_v0  ;;  %283 = vst.msk [vmem:[#allocation2 + $0x38] sm:$0xff] %vm275_vm0, %v1841_v0  ;;  %1578 = vmatprep.mubr.bf16.mxu0 %v1724_v5  ;;  %v1720_v7 = vld [vmem:[%s2444_s1 + $0x20] sm:$0xff]   ;;  %1610 = vmatprep.mubr.bf16.mxu1 %v1725_v6  ;;  %v1723_v10 = vld [vmem:[%s2444_s1 + $0x38] sm:$0xff]   ;;  %s1477_s15 = sshll.u32 %s2459_s28, 3 }
  0x38   : > { %284 = vst.msk [vmem:[#allocation2 + $0x40] sm:$0xff] %vm275_vm0, %v1841_v0  ;;  %285 = vst.msk [vmem:[#allocation2 + $0x48] sm:$0xff] %vm275_vm0, %v1841_v0  ;;  %v1726_v11 = vld [vmem:[%s1959_s8 + $0x8] sm:$0xff]   ;;  %v1728_v13 = vld [vmem:[%s1959_s8 + $0x10] sm:$0xff]   ;;  %s2175_s5 = scalar_lea.vmem %s2446_s3, %s1477_s15 }
  0x39   : > { %286 = vst.msk [vmem:[#allocation2 + $0x50] sm:$0xff] %vm275_vm0, %v1841_v0  ;;  %287 = vst.msk [vmem:[#allocation2 + $0x58] sm:$0xff] %vm275_vm0, %v1841_v0  ;;  %1565 = vmatpush3.bf16.msra.mxu0 %v1717_v2  ;;  %1651 = vmatpush3.bf16.msra.mxu1 %v1717_v2  ;;  %v1727_v12 = vld [vmem:[%s1959_s8 + $0x88] sm:$0xff]   ;;  %v1729_v14 = vld [vmem:[%s1959_s8 + $0x90] sm:$0xff]  }
  0x3a   : > { %288 = vst.msk [vmem:[#allocation2 + $0x60] sm:$0xff] %vm275_vm0, %v1841_v0  ;;  %289 = vst.msk [vmem:[#allocation2 + $0x68] sm:$0xff] %vm275_vm0, %v1841_v0  ;;  %1566 = vmatprep.subr.bf16.mxu0 %v1718_v3  ;;  %1644 = vmatprep.subr.bf16.mxu1 %v1718_v3  ;;  %v1730_v15 = vld [vmem:[%s1959_s8 + $0x18] sm:$0xff]   ;;  %v1732_v17 = vld [vmem:[%s1959_s8 + $0x20] sm:$0xff]  }
  0x3b   : > { %290 = vst.msk [vmem:[#allocation2 + $0x70] sm:$0xff] %vm275_vm0, %v1841_v0  ;;  %291 = vst.msk [vmem:[#allocation2 + $0x78] sm:$0xff] %vm275_vm0, %v1841_v0  ;;  %v1731_v16 = vld [vmem:[%s1959_s8 + $0x98] sm:$0xff]   ;;  %v1733_v18 = vld [vmem:[%s1959_s8 + $0xa0] sm:$0xff]  }
  0x3c   : > { %292 = vst.msk [vmem:[#allocation2 + $0x80] sm:$0xff] %vm275_vm0, %v1841_v0  ;;  %293 = vst.msk [vmem:[#allocation2 + $0x88] sm:$0xff] %vm275_vm0, %v1841_v0  ;;  %v1734_v19 = vld [vmem:[%s1959_s8 + $0x28] sm:$0xff]   ;;  %v1736_v21 = vld [vmem:[%s1959_s8 + $0x30] sm:$0xff]  }
  0x3d   : > { %294 = vst.msk [vmem:[#allocation2 + $0x90] sm:$0xff] %vm275_vm0, %v1841_v0  ;;  %295 = vst.msk [vmem:[#allocation2 + $0x98] sm:$0xff] %vm275_vm0, %v1841_v0  ;;  %1567 = vmatpush3.bf16.msra.mxu0 %v1718_v3  ;;  %1652 = vmatpush3.bf16.msra.mxu1 %v1718_v3  ;;  %v1735_v20 = vld [vmem:[%s1959_s8 + $0xa8] sm:$0xff]   ;;  %v1737_v22 = vld [vmem:[%s1959_s8 + $0xb0] sm:$0xff]  }
  0x3e   : > { %296 = vst.msk [vmem:[#allocation2 + $0xa0] sm:$0xff] %vm275_vm0, %v1841_v0  ;;  %297 = vst.msk [vmem:[#allocation2 + $0xa8] sm:$0xff] %vm275_vm0, %v1841_v0  ;;  %1568 = vmatprep.subr.bf16.mxu0 %v1719_v4  ;;  %1645 = vmatprep.subr.bf16.mxu1 %v1719_v4  ;;  %v1738_v23 = vld [vmem:[%s1959_s8 + $0x38] sm:$0xff]   ;;  %v1740_v25 = vld [vmem:[%s1959_s8 + $0x40] sm:$0xff]  }
  0x3f   : > { %298 = vst.msk [vmem:[#allocation2 + $0xb0] sm:$0xff] %vm275_vm0, %v1841_v0  ;;  %299 = vst.msk [vmem:[#allocation2 + $0xb8] sm:$0xff] %vm275_vm0, %v1841_v0  ;;  %v1739_v24 = vld [vmem:[%s1959_s8 + $0xb8] sm:$0xff]   ;;  %v1741_v26 = vld [vmem:[%s1959_s8 + $0xc0] sm:$0xff]  }
  0x40   : > { %300 = vst.msk [vmem:[#allocation2 + $0xc0] sm:$0xff] %vm275_vm0, %v1841_v0  ;;  %301 = vst.msk [vmem:[#allocation2 + $0xc8] sm:$0xff] %vm275_vm0, %v1841_v0  ;;  %v1742_v27 = vld [vmem:[%s1959_s8 + $0x48] sm:$0xff]   ;;  %v1744_v29 = vld [vmem:[%s1959_s8 + $0x50] sm:$0xff]  }
  0x41   : > { %302 = vst.msk [vmem:[#allocation2 + $0xd0] sm:$0xff] %vm275_vm0, %v1841_v0  ;;  %303 = vst.msk [vmem:[#allocation2 + $0xd8] sm:$0xff] %vm275_vm0, %v1841_v0  ;;  %1569 = vmatpush3.bf16.msra.mxu0 %v1719_v4  ;;  %1653 = vmatpush3.bf16.msra.mxu1 %v1719_v4  ;;  %v1743_v28 = vld [vmem:[%s1959_s8 + $0xc8] sm:$0xff]   ;;  %v1745_v30 = vld [vmem:[%s1959_s8 + $0xd0] sm:$0xff]  }
  0x42   : > { %304 = vst.msk [vmem:[#allocation2 + $0xe0] sm:$0xff] %vm275_vm0, %v1841_v0  ;;  %305 = vst.msk [vmem:[#allocation2 + $0xe8] sm:$0xff] %vm275_vm0, %v1841_v0  ;;  %1570 = vmatprep.subr.bf16.mxu0 %v1720_v7  ;;  %1646 = vmatprep.subr.bf16.mxu1 %v1720_v7  ;;  %v1746_v31 = vld [vmem:[%s1959_s8 + $0x58] sm:$0xff]   ;;  %v1748_v33 = vld [vmem:[%s1959_s8 + $0x60] sm:$0xff]  }
  0x43   : > { %306 = vst.msk [vmem:[#allocation2 + $0xf0] sm:$0xff] %vm275_vm0, %v1841_v0  ;;  %307 = vst.msk [vmem:[#allocation2 + $0xf8] sm:$0xff] %vm275_vm0, %v1841_v0  ;;  %v1747_v32 = vld [vmem:[%s1959_s8 + $0xd8] sm:$0xff]   ;;  %v1749_v34 = vld [vmem:[%s1959_s8 + $0xe0] sm:$0xff]  }
  0x44   : > { %308 = vst.msk [vmem:[#allocation2 + $0x100] sm:$0xff] %vm275_vm0, %v1841_v0  ;;  %309 = vst.msk [vmem:[#allocation2 + $0x108] sm:$0xff] %vm275_vm0, %v1841_v0  ;;  %v1750_v35 = vld [vmem:[%s1959_s8 + $0x68] sm:$0xff]   ;;  %v1752_v37 = vld [vmem:[%s1959_s8 + $0x70] sm:$0xff]  }
  0x45   : > { %310 = vst.msk [vmem:[#allocation2 + $0x110] sm:$0xff] %vm275_vm0, %v1841_v0  ;;  %311 = vst.msk [vmem:[#allocation2 + $0x118] sm:$0xff] %vm275_vm0, %v1841_v0  ;;  %1571 = vmatpush3.bf16.msra.mxu0 %v1720_v7  ;;  %1654 = vmatpush3.bf16.msra.mxu1 %v1720_v7  ;;  %v1751_v36 = vld [vmem:[%s1959_s8 + $0xe8] sm:$0xff]   ;;  %v1753_v38 = vld [vmem:[%s1959_s8 + $0xf0] sm:$0xff]  }
  0x46   : > { %312 = vst.msk [vmem:[#allocation2 + $0x120] sm:$0xff] %vm275_vm0, %v1841_v0  ;;  %313 = vst.msk [vmem:[#allocation2 + $0x128] sm:$0xff] %vm275_vm0, %v1841_v0  ;;  %1572 = vmatprep.subr.bf16.mxu0 %v1721_v8  ;;  %1647 = vmatprep.subr.bf16.mxu1 %v1721_v8  ;;  %v1754_v39 = vld [vmem:[%s1959_s8 + $0x78] sm:$0xff]   ;;  %v342_v41 = vld [vmem:[#allocation2 + $0x10] sm:$0xff] }
  0x47   : > { %314 = vst.msk [vmem:[#allocation2 + $0x130] sm:$0xff] %vm275_vm0, %v1841_v0  ;;  %315 = vst.msk [vmem:[#allocation2 + $0x138] sm:$0xff] %vm275_vm0, %v1841_v0  ;;  %v1755_v40 = vld [vmem:[%s1959_s8 + $0xf8] sm:$0xff]   ;;  %v340_v43 = vld [vmem:[#allocation2] sm:$0xff] }
  0x48   : > { %316 = vst.msk [vmem:[#allocation2 + $0x140] sm:$0xff] %vm275_vm0, %v1841_v0  ;;  %317 = vst.msk [vmem:[#allocation2 + $0x148] sm:$0xff] %vm275_vm0, %v1841_v0  ;;  %v343_v47 = vld [vmem:[#allocation2 + $0x18] sm:$0xff]  ;;  %v341_v53 = vld [vmem:[#allocation2 + $0x8] sm:$0xff] }
  0x49   : > { %318 = vst.msk [vmem:[#allocation2 + $0x150] sm:$0xff] %vm275_vm0, %v1841_v0  ;;  %319 = vst.msk [vmem:[#allocation2 + $0x158] sm:$0xff] %vm275_vm0, %v1841_v0  ;;  %1573 = vmatpush3.bf16.msra.mxu0 %v1721_v8  ;;  %1655 = vmatpush3.bf16.msra.mxu1 %v1721_v8  ;;  %v346_v1 = vld [vmem:[#allocation2 + $0x30] sm:$0xff]  ;;  %v344_v3 = vld [vmem:[#allocation2 + $0x20] sm:$0xff] }
  0x4a   : > { %320 = vst.msk [vmem:[#allocation2 + $0x160] sm:$0xff] %vm275_vm0, %v1841_v0  ;;  %321 = vst.msk [vmem:[#allocation2 + $0x168] sm:$0xff] %vm275_vm0, %v1841_v0  ;;  %1574 = vmatprep.subr.bf16.mxu0 %v1722_v9  ;;  %1648 = vmatprep.subr.bf16.mxu1 %v1722_v9  ;;  %v2170_v5 = vld [vmem:[%s2445_s2] ss:$0 sm:$0xff]  ;;  %v347_v8 = vld [vmem:[#allocation2 + $0x38] sm:$0xff] }
  0x4b   : > { %322 = vst.msk [vmem:[#allocation2 + $0x170] sm:$0xff] %vm275_vm0, %v1841_v0  ;;  %323 = vst.msk [vmem:[#allocation2 + $0x178] sm:$0xff] %vm275_vm0, %v1841_v0  ;;  %v372_v44 = vld [vmem:[#allocation2 + $0x100] sm:$0xff]  ;;  %v373_v54 = vld [vmem:[#allocation2 + $0x108] sm:$0xff] }
  0x4c   : > { %324 = vst.msk [vmem:[#allocation2 + $0x180] sm:$0xff] %vm275_vm0, %v1841_v0  ;;  %325 = vst.msk [vmem:[#allocation2 + $0x188] sm:$0xff] %vm275_vm0, %v1841_v0  ;;  %v374_v42 = vld [vmem:[#allocation2 + $0x110] sm:$0xff]  ;;  %v375_v48 = vld [vmem:[#allocation2 + $0x118] sm:$0xff] }
  0x4d   : > { %326 = vst.msk [vmem:[#allocation2 + $0x190] sm:$0xff] %vm275_vm0, %v1841_v0  ;;  %327 = vst.msk [vmem:[#allocation2 + $0x198] sm:$0xff] %vm275_vm0, %v1841_v0  ;;  %1575 = vmatpush3.bf16.msra.mxu0 %v1722_v9  ;;  %1656 = vmatpush3.bf16.msra.mxu1 %v1722_v9  ;;  %v376_v4 = vld [vmem:[#allocation2 + $0x120] sm:$0xff] }
  0x4e   : > { %328 = vst.msk [vmem:[#allocation2 + $0x1a0] sm:$0xff] %vm275_vm0, %v1841_v0  ;;  %329 = vst.msk [vmem:[#allocation2 + $0x1a8] sm:$0xff] %vm275_vm0, %v1841_v0  ;;  %1576 = vmatprep.subr.bf16.mxu0 %v1723_v10  ;;  %1649 = vmatprep.subr.bf16.mxu1 %v1723_v10  ;;  %v378_v2 = vld [vmem:[#allocation2 + $0x130] sm:$0xff]  ;;  %v379_v9 = vld [vmem:[#allocation2 + $0x138] sm:$0xff] }
  0x4f   : > { %330 = vst.msk [vmem:[#allocation2 + $0x1b0] sm:$0xff] %vm275_vm0, %v1841_v0  ;;  %331 = vst.msk [vmem:[#allocation2 + $0x1b8] sm:$0xff] %vm275_vm0, %v1841_v0 }
  0x50   : > { %332 = vst.msk [vmem:[#allocation2 + $0x1c0] sm:$0xff] %vm275_vm0, %v1841_v0  ;;  %333 = vst.msk [vmem:[#allocation2 + $0x1c8] sm:$0xff] %vm275_vm0, %v1841_v0 }
  0x51   : > { %334 = vst.msk [vmem:[#allocation2 + $0x1d0] sm:$0xff] %vm275_vm0, %v1841_v0  ;;  %335 = vst.msk [vmem:[#allocation2 + $0x1d8] sm:$0xff] %vm275_vm0, %v1841_v0  ;;  %1577 = vmatpush3.bf16.msra.mxu0 %v1723_v10  ;;  %1657 = vmatpush3.bf16.msra.mxu1 %v1723_v10 }
  0x52   : > { %336 = vst.msk [vmem:[#allocation2 + $0x1e0] sm:$0xff] %vm275_vm0, %v1841_v0  ;;  %337 = vst.msk [vmem:[#allocation2 + $0x1e8] sm:$0xff] %vm275_vm0, %v1841_v0 }
  0x53   : > { %338 = vst.msk [vmem:[#allocation2 + $0x1f0] sm:$0xff] %vm275_vm0, %v1841_v0  ;;  %339 = vst.msk [vmem:[#allocation2 + $0x1f8] sm:$0xff] %vm275_vm0, %v1841_v0 }
  0x54   : > { %1579 = vmatmul.mubr.bf16.vlgmr.msra.gmra.mrb[0].mxu0 %v1726_v11  ;;  %1611 = vmatmul.mubr.bf16.vlgmr.msra.gmra.mrb[0].mxu1 %v1727_v12 }
  0x55   : > { %1582 = vmatprep.mubr.bf16.mxu0 %v1728_v13  ;;  %1614 = vmatprep.mubr.bf16.mxu1 %v1729_v14  ;;  %v345_v14 = vld [vmem:[#allocation2 + $0x28] sm:$0xff] }
  0x5c   : > { %1583 = vmatmul.mubr.bf16.gmra.mrb[4].mxu0 %v1730_v15  ;;  %1615 = vmatmul.mubr.bf16.gmra.mrb[4].mxu1 %v1731_v16  ;;  %v377_v15 = vld [vmem:[#allocation2 + $0x128] sm:$0xff] }
  0x5d   : > { %1586 = vmatprep.mubr.bf16.mxu0 %v1732_v17  ;;  %1618 = vmatprep.mubr.bf16.mxu1 %v1733_v18 }
  0x64   : > { %1587 = vmatmul.mubr.bf16.gmra.mrb[8].mxu0 %v1734_v19  ;;  %1619 = vmatmul.mubr.bf16.gmra.mrb[8].mxu1 %v1735_v20 }
  0x65   : > { %1590 = vmatprep.mubr.bf16.mxu0 %v1736_v21  ;;  %1622 = vmatprep.mubr.bf16.mxu1 %v1737_v22 }
  0x6c   : > { %1591 = vmatmul.mubr.bf16.gmra.mrb[12].mxu0 %v1738_v23  ;;  %1623 = vmatmul.mubr.bf16.gmra.mrb[12].mxu1 %v1739_v24 }
  0x6d   : > { %1594 = vmatprep.mubr.bf16.mxu0 %v1740_v25  ;;  %1626 = vmatprep.mubr.bf16.mxu1 %v1741_v26 }
  0x74   : > { %1595 = vmatmul.mubr.bf16.gmra.mrb[16].mxu0 %v1742_v27  ;;  %1627 = vmatmul.mubr.bf16.gmra.mrb[16].mxu1 %v1743_v28 }
  0x75   : > { %1598 = vmatprep.mubr.bf16.mxu0 %v1744_v29  ;;  %1630 = vmatprep.mubr.bf16.mxu1 %v1745_v30 }
  0x7c   : > { %1599 = vmatmul.mubr.bf16.gmra.mrb[20].mxu0 %v1746_v31  ;;  %1631 = vmatmul.mubr.bf16.gmra.mrb[20].mxu1 %v1747_v32 }
  0x7d   : > { %1602 = vmatprep.mubr.bf16.mxu0 %v1748_v33  ;;  %1634 = vmatprep.mubr.bf16.mxu1 %v1749_v34 }
  0x84   : > { %1603 = vmatmul.mubr.bf16.gmra.mrb[24].mxu0 %v1750_v35  ;;  %1635 = vmatmul.mubr.bf16.gmra.mrb[24].mxu1 %v1751_v36 }
  0x85   : > { %1606 = vmatprep.mubr.bf16.mxu0 %v1752_v37  ;;  %1638 = vmatprep.mubr.bf16.mxu1 %v1753_v38 }
  0x8c   : > { %1607 = vmatmul.mubr.bf16.gmra.mrb[28].mxu0 %v1754_v39  ;;  %1639 = vmatmul.mubr.bf16.gmra.mrb[28].mxu1 %v1755_v40 }
 0x127   : > { %v1580_v45 = vpop.f32.mrb[0].mxu0  ;;  %v1612_v46 = vpop.f32.mrb[0].mxu1 }
 0x128   : > { %v1015_v49 = vadd.f32 %v1580_v45, %v342_v41  ;;  %v1047_v50 = vadd.f32 %v1612_v46, %v374_v42  ;;  %v758_v51 = vpop.f32.mrb[1].mxu0  ;;  %v886_v52 = vpop.f32.mrb[1].mxu1  ;;  %v350_v42 = vld [vmem:[#allocation2 + $0x50] sm:$0xff]  ;;  %v380_v45 = vld [vmem:[#allocation2 + $0x140] sm:$0xff] }
 0x129   : > { %v1013_v55 = vadd.f32 %v758_v51, %v340_v43  ;;  %v1045_v56 = vadd.f32 %v886_v52, %v372_v44  ;;  %v1581_v57 = vpop.f32.mrb[2].mxu0  ;;  %v1613_v58 = vpop.f32.mrb[2].mxu1  ;;  %v382_v43 = vld [vmem:[#allocation2 + $0x150] sm:$0xff]  ;;  %v348_v44 = vld [vmem:[#allocation2 + $0x40] sm:$0xff] }
 0x12a   : > { %1080 = vst.msk [vmem:[#allocation2 + $0x10] sm:$0xff] %vm275_vm0, %v1015_v49  ;;  %1112 = vst.msk [vmem:[#allocation2 + $0x110] sm:$0xff] %vm275_vm0, %v1047_v50  ;;  %v1016_v59 = vadd.f32 %v1581_v57, %v343_v47  ;;  %v1048_v60 = vadd.f32 %v1613_v58, %v375_v48  ;;  %v761_v61 = vpop.f32.mrb[3].mxu0  ;;  %v889_v62 = vpop.f32.mrb[3].mxu1  ;;  %v351_v48 = vld [vmem:[#allocation2 + $0x58] sm:$0xff] }
 0x12b   : > { %1078 = vst.msk [vmem:[#allocation2] sm:$0xff] %vm275_vm0, %v1013_v55  ;;  %1110 = vst.msk [vmem:[#allocation2 + $0x100] sm:$0xff] %vm275_vm0, %v1045_v56  ;;  %v1014_v63 = vadd.f32 %v761_v61, %v341_v53  ;;  %v1046_v0 = vadd.f32 %v889_v62, %v373_v54  ;;  %v383_v49 = vld [vmem:[#allocation2 + $0x158] sm:$0xff]  ;;  %v349_v54 = vld [vmem:[#allocation2 + $0x48] sm:$0xff] }
 0x12c   : > { %1081 = vst.msk [vmem:[#allocation2 + $0x18] sm:$0xff] %vm275_vm0, %v1016_v59  ;;  %1113 = vst.msk [vmem:[#allocation2 + $0x118] sm:$0xff] %vm275_vm0, %v1048_v60  ;;  %v381_v55 = vld [vmem:[#allocation2 + $0x148] sm:$0xff] }
 0x12d   : > { %1079 = vst.msk [vmem:[#allocation2 + $0x8] sm:$0xff] %vm275_vm0, %v1014_v63  ;;  %1111 = vst.msk [vmem:[#allocation2 + $0x108] sm:$0xff] %vm275_vm0, %v1046_v0 }
 0x12f   : > { %v1584_v6 = vpop.f32.mrb[4].mxu0  ;;  %v1616_v7 = vpop.f32.mrb[4].mxu1 }
 0x130   : > { %v1019_v10 = vadd.f32 %v1584_v6, %v346_v1  ;;  %v1051_v11 = vadd.f32 %v1616_v7, %v378_v2  ;;  %v774_v12 = vpop.f32.mrb[5].mxu0  ;;  %v902_v13 = vpop.f32.mrb[5].mxu1 }
 0x131   : > { %v1147_v16 = vld [vmem:[#allocation2 + $0x10] sm:$0xff]  ;;  %v1017_v18 = vadd.f32 %v774_v12, %v344_v3  ;;  %v1049_v19 = vadd.f32 %v902_v13, %v376_v4  ;;  %v1585_v20 = vpop.f32.mrb[6].mxu0  ;;  %v1617_v21 = vpop.f32.mrb[6].mxu1 }
 0x132   : > { %v1179_v17 = vld [vmem:[#allocation2 + $0x110] sm:$0xff]  ;;  %v1218_v22 = vadd.f32 %v2170_v5, %v1147_v16  ;;  %v1145_v24 = vld [vmem:[#allocation2] sm:$0xff]  ;;  %1084 = vst.msk [vmem:[#allocation2 + $0x30] sm:$0xff] %vm275_vm0, %v1019_v10  ;;  %1116 = vst.msk [vmem:[#allocation2 + $0x130] sm:$0xff] %vm275_vm0, %v1051_v11  ;;  %v1020_v26 = vadd.f32 %v1585_v20, %v347_v8  ;;  %v1052_v27 = vadd.f32 %v1617_v21, %v379_v9  ;;  %v777_v28 = vpop.f32.mrb[7].mxu0  ;;  %v905_v29 = vpop.f32.mrb[7].mxu1 }
 0x133   : > { %v1250_v23 = vadd.f32 %v2170_v5, %v1179_v17  ;;  %v1177_v25 = vld [vmem:[#allocation2 + $0x100] sm:$0xff]  ;;  %v1216_v30 = vadd.f32 %v2170_v5, %v1145_v24  ;;  %v1148_v32 = vld [vmem:[#allocation2 + $0x18] sm:$0xff]  ;;  %1082 = vst.msk [vmem:[#allocation2 + $0x20] sm:$0xff] %vm275_vm0, %v1017_v18  ;;  %1114 = vst.msk [vmem:[#allocation2 + $0x120] sm:$0xff] %vm275_vm0, %v1049_v19  ;;  %v1018_v34 = vadd.f32 %v777_v28, %v345_v14 }
 0x134   : > { %v1248_v31 = vadd.f32 %v2170_v5, %v1177_v25  ;;  %v1180_v33 = vld [vmem:[#allocation2 + $0x118] sm:$0xff]  ;;  %v1050_v35 = vadd.f32 %v905_v29, %v377_v15  ;;  %1282 = vst.msk [vmem:[%s2175_s5 + $0x10] sm:$0xff] %vm275_vm0, %v1218_v22  ;;  %v1219_v36 = vadd.f32 %v2170_v5, %v1148_v32  ;;  %v1146_v38 = vld [vmem:[#allocation2 + $0x8] sm:$0xff]  ;;  %1085 = vst.msk [vmem:[#allocation2 + $0x38] sm:$0xff] %vm275_vm0, %v1020_v26 }
 0x135   : > { %1314 = vst.msk [vmem:[%s2175_s5 + $0x110] sm:$0xff] %vm275_vm0, %v1250_v23  ;;  %v1251_v37 = vadd.f32 %v2170_v5, %v1180_v33  ;;  %v1178_v39 = vld [vmem:[#allocation2 + $0x108] sm:$0xff]  ;;  %1117 = vst.msk [vmem:[#allocation2 + $0x138] sm:$0xff] %vm275_vm0, %v1052_v27  ;;  %v1217_v40 = vadd.f32 %v2170_v5, %v1146_v38  ;;  %v354_v19 = vld [vmem:[#allocation2 + $0x70] sm:$0xff] }
 0x136   : > { %1280 = vst.msk [vmem:[%s2175_s5] sm:$0xff] %vm275_vm0, %v1216_v30  ;;  %1312 = vst.msk [vmem:[%s2175_s5 + $0x100] sm:$0xff] %vm275_vm0, %v1248_v31  ;;  %v1249_v41 = vadd.f32 %v2170_v5, %v1178_v39  ;;  %v386_v20 = vld [vmem:[#allocation2 + $0x170] sm:$0xff]  ;;  %v352_v21 = vld [vmem:[#allocation2 + $0x60] sm:$0xff] }
 0x137   : > { %1083 = vst.msk [vmem:[#allocation2 + $0x28] sm:$0xff] %vm275_vm0, %v1018_v34  ;;  %1115 = vst.msk [vmem:[#allocation2 + $0x128] sm:$0xff] %vm275_vm0, %v1050_v35  ;;  %v1588_v46 = vpop.f32.mrb[8].mxu0  ;;  %v1620_v47 = vpop.f32.mrb[8].mxu1  ;;  %v384_v22 = vld [vmem:[#allocation2 + $0x160] sm:$0xff]  ;;  %v355_v25 = vld [vmem:[#allocation2 + $0x78] sm:$0xff] }
 0x138   : > { %1283 = vst.msk [vmem:[%s2175_s5 + $0x18] sm:$0xff] %vm275_vm0, %v1219_v36  ;;  %1315 = vst.msk [vmem:[%s2175_s5 + $0x118] sm:$0xff] %vm275_vm0, %v1251_v37  ;;  %v1023_v50 = vadd.f32 %v1588_v46, %v350_v42  ;;  %v1055_v51 = vadd.f32 %v1620_v47, %v382_v43  ;;  %v790_v52 = vpop.f32.mrb[9].mxu0  ;;  %v918_v53 = vpop.f32.mrb[9].mxu1  ;;  %v387_v26 = vld [vmem:[#allocation2 + $0x178] sm:$0xff]  ;;  %v353_v31 = vld [vmem:[#allocation2 + $0x68] sm:$0xff] }
 0x139   : > { %1281 = vst.msk [vmem:[%s2175_s5 + $0x8] sm:$0xff] %vm275_vm0, %v1217_v40  ;;  %1313 = vst.msk [vmem:[%s2175_s5 + $0x108] sm:$0xff] %vm275_vm0, %v1249_v41  ;;  %v1151_v56 = vld [vmem:[#allocation2 + $0x30] sm:$0xff]  ;;  %v1021_v58 = vadd.f32 %v790_v52, %v348_v44  ;;  %v1053_v59 = vadd.f32 %v918_v53, %v380_v45  ;;  %v1589_v60 = vpop.f32.mrb[10].mxu0  ;;  %v1621_v61 = vpop.f32.mrb[10].mxu1  ;;  %v385_v32 = vld [vmem:[#allocation2 + $0x168] sm:$0xff] }
 0x13a   : > { %v1183_v57 = vld [vmem:[#allocation2 + $0x130] sm:$0xff]  ;;  %v1222_v62 = vadd.f32 %v2170_v5, %v1151_v56  ;;  %v1149_v0 = vld [vmem:[#allocation2 + $0x20] sm:$0xff]  ;;  %1088 = vst.msk [vmem:[#allocation2 + $0x50] sm:$0xff] %vm275_vm0, %v1023_v50  ;;  %1120 = vst.msk [vmem:[#allocation2 + $0x150] sm:$0xff] %vm275_vm0, %v1055_v51  ;;  %v1024_v2 = vadd.f32 %v1589_v60, %v351_v48  ;;  %v1056_v3 = vadd.f32 %v1621_v61, %v383_v49  ;;  %v793_v4 = vpop.f32.mrb[11].mxu0  ;;  %v921_v6 = vpop.f32.mrb[11].mxu1 }
 0x13b   : > { %v1254_v63 = vadd.f32 %v2170_v5, %v1183_v57  ;;  %v1181_v1 = vld [vmem:[#allocation2 + $0x120] sm:$0xff]  ;;  %v1220_v7 = vadd.f32 %v2170_v5, %v1149_v0  ;;  %v1152_v9 = vld [vmem:[#allocation2 + $0x38] sm:$0xff]  ;;  %1086 = vst.msk [vmem:[#allocation2 + $0x40] sm:$0xff] %vm275_vm0, %v1021_v58  ;;  %1118 = vst.msk [vmem:[#allocation2 + $0x140] sm:$0xff] %vm275_vm0, %v1053_v59  ;;  %v1022_v11 = vadd.f32 %v793_v4, %v349_v54 }
 0x13c   : > { %v1252_v8 = vadd.f32 %v2170_v5, %v1181_v1  ;;  %v1184_v10 = vld [vmem:[#allocation2 + $0x138] sm:$0xff]  ;;  %v1054_v12 = vadd.f32 %v921_v6, %v381_v55  ;;  %1286 = vst.msk [vmem:[%s2175_s5 + $0x30] sm:$0xff] %vm275_vm0, %v1222_v62  ;;  %v1223_v13 = vadd.f32 %v2170_v5, %v1152_v9  ;;  %1089 = vst.msk [vmem:[#allocation2 + $0x58] sm:$0xff] %vm275_vm0, %v1024_v2  ;;  %v358_v59 = vld [vmem:[#allocation2 + $0x90] sm:$0xff] }
 0x13d   : > { %1318 = vst.msk [vmem:[%s2175_s5 + $0x130] sm:$0xff] %vm275_vm0, %v1254_v63  ;;  %v1255_v14 = vadd.f32 %v2170_v5, %v1184_v10  ;;  %1121 = vst.msk [vmem:[#allocation2 + $0x158] sm:$0xff] %vm275_vm0, %v1056_v3  ;;  %v390_v60 = vld [vmem:[#allocation2 + $0x190] sm:$0xff]  ;;  %v356_v61 = vld [vmem:[#allocation2 + $0x80] sm:$0xff] }
 0x13e   : > { %v1150_v15 = vld [vmem:[#allocation2 + $0x28] sm:$0xff]  ;;  %1284 = vst.msk [vmem:[%s2175_s5 + $0x20] sm:$0xff] %vm275_vm0, %v1220_v7  ;;  %1316 = vst.msk [vmem:[%s2175_s5 + $0x120] sm:$0xff] %vm275_vm0, %v1252_v8  ;;  %v388_v62 = vld [vmem:[#allocation2 + $0x180] sm:$0xff] }
 0x13f   : > { %v1182_v16 = vld [vmem:[#allocation2 + $0x128] sm:$0xff]  ;;  %v1221_v17 = vadd.f32 %v2170_v5, %v1150_v15  ;;  %1087 = vst.msk [vmem:[#allocation2 + $0x48] sm:$0xff] %vm275_vm0, %v1022_v11  ;;  %1119 = vst.msk [vmem:[#allocation2 + $0x148] sm:$0xff] %vm275_vm0, %v1054_v12  ;;  %v1592_v23 = vpop.f32.mrb[12].mxu0  ;;  %v1624_v24 = vpop.f32.mrb[12].mxu1  ;;  %v359_v1 = vld [vmem:[#allocation2 + $0x98] sm:$0xff] }
 0x140   : > { %v1253_v18 = vadd.f32 %v2170_v5, %v1182_v16  ;;  %1287 = vst.msk [vmem:[%s2175_s5 + $0x38] sm:$0xff] %vm275_vm0, %v1223_v13  ;;  %1319 = vst.msk [vmem:[%s2175_s5 + $0x138] sm:$0xff] %vm275_vm0, %v1255_v14  ;;  %v1027_v27 = vadd.f32 %v1592_v23, %v354_v19  ;;  %v1059_v28 = vadd.f32 %v1624_v24, %v386_v20  ;;  %v806_v29 = vpop.f32.mrb[13].mxu0  ;;  %v934_v30 = vpop.f32.mrb[13].mxu1  ;;  %v391_v2 = vld [vmem:[#allocation2 + $0x198] sm:$0xff]  ;;  %v357_v8 = vld [vmem:[#allocation2 + $0x88] sm:$0xff] }
 0x141   : > { %1285 = vst.msk [vmem:[%s2175_s5 + $0x28] sm:$0xff] %vm275_vm0, %v1221_v17  ;;  %v1155_v33 = vld [vmem:[#allocation2 + $0x50] sm:$0xff]  ;;  %v1025_v35 = vadd.f32 %v806_v29, %v352_v21  ;;  %v1057_v36 = vadd.f32 %v934_v30, %v384_v22  ;;  %v1593_v37 = vpop.f32.mrb[14].mxu0  ;;  %v1625_v38 = vpop.f32.mrb[14].mxu1  ;;  %v389_v9 = vld [vmem:[#allocation2 + $0x188] sm:$0xff] }
 0x142   : > { %1317 = vst.msk [vmem:[%s2175_s5 + $0x128] sm:$0xff] %vm275_vm0, %v1253_v18  ;;  %v1187_v34 = vld [vmem:[#allocation2 + $0x150] sm:$0xff]  ;;  %v1226_v39 = vadd.f32 %v2170_v5, %v1155_v33  ;;  %v1153_v41 = vld [vmem:[#allocation2 + $0x40] sm:$0xff]  ;;  %1092 = vst.msk [vmem:[#allocation2 + $0x70] sm:$0xff] %vm275_vm0, %v1027_v27  ;;  %v1028_v43 = vadd.f32 %v1593_v37, %v355_v25  ;;  %v1060_v44 = vadd.f32 %v1625_v38, %v387_v26  ;;  %v809_v45 = vpop.f32.mrb[15].mxu0  ;;  %v937_v46 = vpop.f32.mrb[15].mxu1 }
 0x143   : > { %v1258_v40 = vadd.f32 %v2170_v5, %v1187_v34  ;;  %v1185_v42 = vld [vmem:[#allocation2 + $0x140] sm:$0xff]  ;;  %1124 = vst.msk [vmem:[#allocation2 + $0x170] sm:$0xff] %vm275_vm0, %v1059_v28  ;;  %v1224_v47 = vadd.f32 %v2170_v5, %v1153_v41  ;;  %v1156_v49 = vld [vmem:[#allocation2 + $0x58] sm:$0xff]  ;;  %1090 = vst.msk [vmem:[#allocation2 + $0x60] sm:$0xff] %vm275_vm0, %v1025_v35  ;;  %v1026_v51 = vadd.f32 %v809_v45, %v353_v31 }
 0x144   : > { %v1256_v48 = vadd.f32 %v2170_v5, %v1185_v42  ;;  %v1188_v50 = vld [vmem:[#allocation2 + $0x158] sm:$0xff]  ;;  %1122 = vst.msk [vmem:[#allocation2 + $0x160] sm:$0xff] %vm275_vm0, %v1057_v36  ;;  %v1058_v52 = vadd.f32 %v937_v46, %v385_v32  ;;  %1290 = vst.msk [vmem:[%s2175_s5 + $0x50] sm:$0xff] %vm275_vm0, %v1226_v39  ;;  %v1227_v53 = vadd.f32 %v2170_v5, %v1156_v49  ;;  %v362_v36 = vld [vmem:[#allocation2 + $0xb0] sm:$0xff] }
 0x145   : > { %1322 = vst.msk [vmem:[%s2175_s5 + $0x150] sm:$0xff] %vm275_vm0, %v1258_v40  ;;  %v1259_v54 = vadd.f32 %v2170_v5, %v1188_v50  ;;  %1093 = vst.msk [vmem:[#allocation2 + $0x78] sm:$0xff] %vm275_vm0, %v1028_v43  ;;  %v394_v37 = vld [vmem:[#allocation2 + $0x1b0] sm:$0xff]  ;;  %v360_v38 = vld [vmem:[#allocation2 + $0xa0] sm:$0xff] }
 0x146   : > { %v1154_v55 = vld [vmem:[#allocation2 + $0x48] sm:$0xff]  ;;  %1125 = vst.msk [vmem:[#allocation2 + $0x178] sm:$0xff] %vm275_vm0, %v1060_v44  ;;  %1288 = vst.msk [vmem:[%s2175_s5 + $0x40] sm:$0xff] %vm275_vm0, %v1224_v47  ;;  %v392_v39 = vld [vmem:[#allocation2 + $0x1a0] sm:$0xff] }
 0x147   : > { %v1186_v56 = vld [vmem:[#allocation2 + $0x148] sm:$0xff]  ;;  %1320 = vst.msk [vmem:[%s2175_s5 + $0x140] sm:$0xff] %vm275_vm0, %v1256_v48  ;;  %v1225_v57 = vadd.f32 %v2170_v5, %v1154_v55  ;;  %1091 = vst.msk [vmem:[#allocation2 + $0x68] sm:$0xff] %vm275_vm0, %v1026_v51  ;;  %v1596_v63 = vpop.f32.mrb[16].mxu0  ;;  %v1628_v0 = vpop.f32.mrb[16].mxu1  ;;  %v363_v42 = vld [vmem:[#allocation2 + $0xb8] sm:$0xff] }
 0x148   : > { %v1257_v58 = vadd.f32 %v2170_v5, %v1186_v56  ;;  %1123 = vst.msk [vmem:[#allocation2 + $0x168] sm:$0xff] %vm275_vm0, %v1058_v52  ;;  %1291 = vst.msk [vmem:[%s2175_s5 + $0x58] sm:$0xff] %vm275_vm0, %v1227_v53  ;;  %v1031_v3 = vadd.f32 %v1596_v63, %v358_v59  ;;  %v1063_v4 = vadd.f32 %v1628_v0, %v390_v60  ;;  %v822_v6 = vpop.f32.mrb[17].mxu0  ;;  %v950_v7 = vpop.f32.mrb[17].mxu1  ;;  %v395_v43 = vld [vmem:[#allocation2 + $0x1b8] sm:$0xff]  ;;  %v361_v48 = vld [vmem:[#allocation2 + $0xa8] sm:$0xff] }
 0x149   : > { %1323 = vst.msk [vmem:[%s2175_s5 + $0x158] sm:$0xff] %vm275_vm0, %v1259_v54  ;;  %1289 = vst.msk [vmem:[%s2175_s5 + $0x48] sm:$0xff] %vm275_vm0, %v1225_v57  ;;  %v1159_v10 = vld [vmem:[#allocation2 + $0x70] sm:$0xff]  ;;  %v1029_v12 = vadd.f32 %v822_v6, %v356_v61  ;;  %v1061_v13 = vadd.f32 %v950_v7, %v388_v62  ;;  %v1597_v14 = vpop.f32.mrb[18].mxu0  ;;  %v1629_v15 = vpop.f32.mrb[18].mxu1  ;;  %v393_v49 = vld [vmem:[#allocation2 + $0x1a8] sm:$0xff] }
 0x14a   : > { %1321 = vst.msk [vmem:[%s2175_s5 + $0x148] sm:$0xff] %vm275_vm0, %v1257_v58  ;;  %v1191_v11 = vld [vmem:[#allocation2 + $0x170] sm:$0xff]  ;;  %v1230_v16 = vadd.f32 %v2170_v5, %v1159_v10  ;;  %v1157_v18 = vld [vmem:[#allocation2 + $0x60] sm:$0xff]  ;;  %1096 = vst.msk [vmem:[#allocation2 + $0x90] sm:$0xff] %vm275_vm0, %v1031_v3  ;;  %v1032_v20 = vadd.f32 %v1597_v14, %v359_v1  ;;  %v1064_v21 = vadd.f32 %v1629_v15, %v391_v2  ;;  %v825_v22 = vpop.f32.mrb[19].mxu0  ;;  %v953_v23 = vpop.f32.mrb[19].mxu1 }
 0x14b   : > { %v1262_v17 = vadd.f32 %v2170_v5, %v1191_v11  ;;  %v1189_v19 = vld [vmem:[#allocation2 + $0x160] sm:$0xff]  ;;  %1128 = vst.msk [vmem:[#allocation2 + $0x190] sm:$0xff] %vm275_vm0, %v1063_v4  ;;  %v1228_v24 = vadd.f32 %v2170_v5, %v1157_v18  ;;  %1094 = vst.msk [vmem:[#allocation2 + $0x80] sm:$0xff] %vm275_vm0, %v1029_v12  ;;  %v1030_v28 = vadd.f32 %v825_v22, %v357_v8  ;;  %v398_v14 = vld [vmem:[#allocation2 + $0x1d0] sm:$0xff] }
 0x14c   : > { %v1260_v25 = vadd.f32 %v2170_v5, %v1189_v19  ;;  %v1160_v26 = vld [vmem:[#allocation2 + $0x78] sm:$0xff]  ;;  %1126 = vst.msk [vmem:[#allocation2 + $0x180] sm:$0xff] %vm275_vm0, %v1061_v13  ;;  %v1062_v29 = vadd.f32 %v953_v23, %v389_v9  ;;  %1294 = vst.msk [vmem:[%s2175_s5 + $0x70] sm:$0xff] %vm275_vm0, %v1230_v16  ;;  %v366_v13 = vld [vmem:[#allocation2 + $0xd0] sm:$0xff] }
 0x14d   : > { %v1192_v27 = vld [vmem:[#allocation2 + $0x178] sm:$0xff]  ;;  %1326 = vst.msk [vmem:[%s2175_s5 + $0x170] sm:$0xff] %vm275_vm0, %v1262_v17  ;;  %v1231_v30 = vadd.f32 %v2170_v5, %v1160_v26  ;;  %1097 = vst.msk [vmem:[#allocation2 + $0x98] sm:$0xff] %vm275_vm0, %v1032_v20  ;;  %v364_v15 = vld [vmem:[#allocation2 + $0xc0] sm:$0xff] }
 0x14e   : > { %v1263_v31 = vadd.f32 %v2170_v5, %v1192_v27  ;;  %v1158_v32 = vld [vmem:[#allocation2 + $0x68] sm:$0xff]  ;;  %1129 = vst.msk [vmem:[#allocation2 + $0x198] sm:$0xff] %vm275_vm0, %v1064_v21  ;;  %1292 = vst.msk [vmem:[%s2175_s5 + $0x60] sm:$0xff] %vm275_vm0, %v1228_v24  ;;  %v396_v16 = vld [vmem:[#allocation2 + $0x1c0] sm:$0xff] }
 0x14f   : > { %v1190_v33 = vld [vmem:[#allocation2 + $0x168] sm:$0xff]  ;;  %1324 = vst.msk [vmem:[%s2175_s5 + $0x160] sm:$0xff] %vm275_vm0, %v1260_v25  ;;  %v1229_v34 = vadd.f32 %v2170_v5, %v1158_v32  ;;  %1095 = vst.msk [vmem:[#allocation2 + $0x88] sm:$0xff] %vm275_vm0, %v1030_v28  ;;  %v1600_v40 = vpop.f32.mrb[20].mxu0  ;;  %v1632_v41 = vpop.f32.mrb[20].mxu1  ;;  %v367_v19 = vld [vmem:[#allocation2 + $0xd8] sm:$0xff] }
 0x150   : > { %v1261_v35 = vadd.f32 %v2170_v5, %v1190_v33  ;;  %1127 = vst.msk [vmem:[#allocation2 + $0x188] sm:$0xff] %vm275_vm0, %v1062_v29  ;;  %1295 = vst.msk [vmem:[%s2175_s5 + $0x78] sm:$0xff] %vm275_vm0, %v1231_v30  ;;  %v1035_v44 = vadd.f32 %v1600_v40, %v362_v36  ;;  %v1067_v45 = vadd.f32 %v1632_v41, %v394_v37  ;;  %v838_v46 = vpop.f32.mrb[21].mxu0  ;;  %v966_v47 = vpop.f32.mrb[21].mxu1  ;;  %v399_v20 = vld [vmem:[#allocation2 + $0x1d8] sm:$0xff]  ;;  %v365_v25 = vld [vmem:[#allocation2 + $0xc8] sm:$0xff] }
 0x151   : > { %1327 = vst.msk [vmem:[%s2175_s5 + $0x178] sm:$0xff] %vm275_vm0, %v1263_v31  ;;  %1293 = vst.msk [vmem:[%s2175_s5 + $0x68] sm:$0xff] %vm275_vm0, %v1229_v34  ;;  %v1163_v50 = vld [vmem:[#allocation2 + $0x90] sm:$0xff]  ;;  %v1033_v52 = vadd.f32 %v838_v46, %v360_v38  ;;  %v1065_v53 = vadd.f32 %v966_v47, %v392_v39  ;;  %v1601_v54 = vpop.f32.mrb[22].mxu0  ;;  %v1633_v55 = vpop.f32.mrb[22].mxu1  ;;  %v397_v26 = vld [vmem:[#allocation2 + $0x1c8] sm:$0xff] }
 0x152   : > { %1325 = vst.msk [vmem:[%s2175_s5 + $0x168] sm:$0xff] %vm275_vm0, %v1261_v35  ;;  %v1195_v51 = vld [vmem:[#allocation2 + $0x190] sm:$0xff]  ;;  %v1234_v56 = vadd.f32 %v2170_v5, %v1163_v50  ;;  %v1161_v58 = vld [vmem:[#allocation2 + $0x80] sm:$0xff]  ;;  %1100 = vst.msk [vmem:[#allocation2 + $0xb0] sm:$0xff] %vm275_vm0, %v1035_v44  ;;  %v1036_v60 = vadd.f32 %v1601_v54, %v363_v42  ;;  %v1068_v61 = vadd.f32 %v1633_v55, %v395_v43  ;;  %v841_v62 = vpop.f32.mrb[23].mxu0  ;;  %v969_v63 = vpop.f32.mrb[23].mxu1 }
 0x153   : > { %v1266_v57 = vadd.f32 %v2170_v5, %v1195_v51  ;;  %v1193_v59 = vld [vmem:[#allocation2 + $0x180] sm:$0xff]  ;;  %1132 = vst.msk [vmem:[#allocation2 + $0x1b0] sm:$0xff] %vm275_vm0, %v1067_v45  ;;  %v1232_v0 = vadd.f32 %v2170_v5, %v1161_v58  ;;  %1098 = vst.msk [vmem:[#allocation2 + $0xa0] sm:$0xff] %vm275_vm0, %v1033_v52  ;;  %v1034_v4 = vadd.f32 %v841_v62, %v361_v48  ;;  %v402_v54 = vld [vmem:[#allocation2 + $0x1f0] sm:$0xff] }
 0x154   : > { %v1264_v1 = vadd.f32 %v2170_v5, %v1193_v59  ;;  %v1164_v2 = vld [vmem:[#allocation2 + $0x98] sm:$0xff]  ;;  %1130 = vst.msk [vmem:[#allocation2 + $0x1a0] sm:$0xff] %vm275_vm0, %v1065_v53  ;;  %v1066_v6 = vadd.f32 %v969_v63, %v393_v49  ;;  %1298 = vst.msk [vmem:[%s2175_s5 + $0x90] sm:$0xff] %vm275_vm0, %v1234_v56  ;;  %v370_v53 = vld [vmem:[#allocation2 + $0xf0] sm:$0xff] }
 0x155   : > { %v1196_v3 = vld [vmem:[#allocation2 + $0x198] sm:$0xff]  ;;  %1330 = vst.msk [vmem:[%s2175_s5 + $0x190] sm:$0xff] %vm275_vm0, %v1266_v57  ;;  %v1235_v7 = vadd.f32 %v2170_v5, %v1164_v2  ;;  %1101 = vst.msk [vmem:[#allocation2 + $0xb8] sm:$0xff] %vm275_vm0, %v1036_v60  ;;  %v368_v55 = vld [vmem:[#allocation2 + $0xe0] sm:$0xff] }
 0x156   : > { %v1267_v8 = vadd.f32 %v2170_v5, %v1196_v3  ;;  %v1162_v9 = vld [vmem:[#allocation2 + $0x88] sm:$0xff]  ;;  %1133 = vst.msk [vmem:[#allocation2 + $0x1b8] sm:$0xff] %vm275_vm0, %v1068_v61  ;;  %1296 = vst.msk [vmem:[%s2175_s5 + $0x80] sm:$0xff] %vm275_vm0, %v1232_v0  ;;  %v400_v56 = vld [vmem:[#allocation2 + $0x1e0] sm:$0xff] }
 0x157   : > { %v1194_v10 = vld [vmem:[#allocation2 + $0x188] sm:$0xff]  ;;  %1328 = vst.msk [vmem:[%s2175_s5 + $0x180] sm:$0xff] %vm275_vm0, %v1264_v1  ;;  %v1233_v11 = vadd.f32 %v2170_v5, %v1162_v9  ;;  %1099 = vst.msk [vmem:[#allocation2 + $0xa8] sm:$0xff] %vm275_vm0, %v1034_v4  ;;  %v1604_v17 = vpop.f32.mrb[24].mxu0  ;;  %v1636_v18 = vpop.f32.mrb[24].mxu1  ;;  %v371_v59 = vld [vmem:[#allocation2 + $0xf8] sm:$0xff] }
 0x158   : > { %v1265_v12 = vadd.f32 %v2170_v5, %v1194_v10  ;;  %1131 = vst.msk [vmem:[#allocation2 + $0x1a8] sm:$0xff] %vm275_vm0, %v1066_v6  ;;  %1299 = vst.msk [vmem:[%s2175_s5 + $0x98] sm:$0xff] %vm275_vm0, %v1235_v7  ;;  %v1039_v21 = vadd.f32 %v1604_v17, %v366_v13  ;;  %v1071_v22 = vadd.f32 %v1636_v18, %v398_v14  ;;  %v854_v23 = vpop.f32.mrb[25].mxu0  ;;  %v982_v24 = vpop.f32.mrb[25].mxu1  ;;  %v403_v60 = vld [vmem:[#allocation2 + $0x1f8] sm:$0xff]  ;;  %v369_v1 = vld [vmem:[#allocation2 + $0xe8] sm:$0xff] }
 0x159   : > { %1331 = vst.msk [vmem:[%s2175_s5 + $0x198] sm:$0xff] %vm275_vm0, %v1267_v8  ;;  %1297 = vst.msk [vmem:[%s2175_s5 + $0x88] sm:$0xff] %vm275_vm0, %v1233_v11  ;;  %v1167_v27 = vld [vmem:[#allocation2 + $0xb0] sm:$0xff]  ;;  %v1037_v29 = vadd.f32 %v854_v23, %v364_v15  ;;  %v1069_v30 = vadd.f32 %v982_v24, %v396_v16  ;;  %v1605_v31 = vpop.f32.mrb[26].mxu0  ;;  %v1637_v32 = vpop.f32.mrb[26].mxu1  ;;  %v401_v2 = vld [vmem:[#allocation2 + $0x1e8] sm:$0xff] }
 0x15a   : > { %1329 = vst.msk [vmem:[%s2175_s5 + $0x188] sm:$0xff] %vm275_vm0, %v1265_v12  ;;  %v1199_v28 = vld [vmem:[#allocation2 + $0x1b0] sm:$0xff]  ;;  %v1238_v33 = vadd.f32 %v2170_v5, %v1167_v27  ;;  %v1165_v35 = vld [vmem:[#allocation2 + $0xa0] sm:$0xff]  ;;  %1104 = vst.msk [vmem:[#allocation2 + $0xd0] sm:$0xff] %vm275_vm0, %v1039_v21  ;;  %v1040_v37 = vadd.f32 %v1605_v31, %v367_v19  ;;  %v1072_v38 = vadd.f32 %v1637_v32, %v399_v20  ;;  %v857_v39 = vpop.f32.mrb[27].mxu0  ;;  %v985_v40 = vpop.f32.mrb[27].mxu1 }
 0x15b   : > { %v1270_v34 = vadd.f32 %v2170_v5, %v1199_v28  ;;  %v1197_v36 = vld [vmem:[#allocation2 + $0x1a0] sm:$0xff]  ;;  %1136 = vst.msk [vmem:[#allocation2 + $0x1d0] sm:$0xff] %vm275_vm0, %v1071_v22  ;;  %v1236_v41 = vadd.f32 %v2170_v5, %v1165_v35  ;;  %1102 = vst.msk [vmem:[#allocation2 + $0xc0] sm:$0xff] %vm275_vm0, %v1037_v29  ;;  %v1038_v45 = vadd.f32 %v857_v39, %v365_v25 }
 0x15c   : > { %v1268_v42 = vadd.f32 %v2170_v5, %v1197_v36  ;;  %v1168_v43 = vld [vmem:[#allocation2 + $0xb8] sm:$0xff]  ;;  %1134 = vst.msk [vmem:[#allocation2 + $0x1c0] sm:$0xff] %vm275_vm0, %v1069_v30  ;;  %v1070_v46 = vadd.f32 %v985_v40, %v397_v26  ;;  %1302 = vst.msk [vmem:[%s2175_s5 + $0xb0] sm:$0xff] %vm275_vm0, %v1238_v33 }
 0x15d   : > { %v1200_v44 = vld [vmem:[#allocation2 + $0x1b8] sm:$0xff]  ;;  %1334 = vst.msk [vmem:[%s2175_s5 + $0x1b0] sm:$0xff] %vm275_vm0, %v1270_v34  ;;  %v1239_v47 = vadd.f32 %v2170_v5, %v1168_v43  ;;  %1105 = vst.msk [vmem:[#allocation2 + $0xd8] sm:$0xff] %vm275_vm0, %v1040_v37 }
 0x15e   : > { %v1271_v48 = vadd.f32 %v2170_v5, %v1200_v44  ;;  %v1166_v49 = vld [vmem:[#allocation2 + $0xa8] sm:$0xff]  ;;  %1137 = vst.msk [vmem:[#allocation2 + $0x1d8] sm:$0xff] %vm275_vm0, %v1072_v38  ;;  %1300 = vst.msk [vmem:[%s2175_s5 + $0xa0] sm:$0xff] %vm275_vm0, %v1236_v41 }
 0x15f   : > { %v1198_v50 = vld [vmem:[#allocation2 + $0x1a8] sm:$0xff]  ;;  %1332 = vst.msk [vmem:[%s2175_s5 + $0x1a0] sm:$0xff] %vm275_vm0, %v1268_v42  ;;  %v1237_v51 = vadd.f32 %v2170_v5, %v1166_v49  ;;  %1103 = vst.msk [vmem:[#allocation2 + $0xc8] sm:$0xff] %vm275_vm0, %v1038_v45  ;;  %v1608_v57 = vpop.f32.mrb[28].mxu0  ;;  %v1640_v58 = vpop.f32.mrb[28].mxu1 }
 0x160   : > { %v1269_v52 = vadd.f32 %v2170_v5, %v1198_v50  ;;  %1135 = vst.msk [vmem:[#allocation2 + $0x1c8] sm:$0xff] %vm275_vm0, %v1070_v46  ;;  %1303 = vst.msk [vmem:[%s2175_s5 + $0xb8] sm:$0xff] %vm275_vm0, %v1239_v47  ;;  %v1043_v61 = vadd.f32 %v1608_v57, %v370_v53  ;;  %v1075_v62 = vadd.f32 %v1640_v58, %v402_v54  ;;  %v870_v63 = vpop.f32.mrb[29].mxu0  ;;  %v998_v0 = vpop.f32.mrb[29].mxu1 }
 0x161   : > { %1335 = vst.msk [vmem:[%s2175_s5 + $0x1b8] sm:$0xff] %vm275_vm0, %v1271_v48  ;;  %1301 = vst.msk [vmem:[%s2175_s5 + $0xa8] sm:$0xff] %vm275_vm0, %v1237_v51  ;;  %v1171_v3 = vld [vmem:[#allocation2 + $0xd0] sm:$0xff]  ;;  %v1041_v6 = vadd.f32 %v870_v63, %v368_v55  ;;  %v1073_v7 = vadd.f32 %v998_v0, %v400_v56  ;;  %v1609_v8 = vpop.f32.mrb[30].mxu0  ;;  %v1641_v9 = vpop.f32.mrb[30].mxu1 }
 0x162   : > { %1333 = vst.msk [vmem:[%s2175_s5 + $0x1a8] sm:$0xff] %vm275_vm0, %v1269_v52  ;;  %v1203_v4 = vld [vmem:[#allocation2 + $0x1d0] sm:$0xff]  ;;  %v1242_v10 = vadd.f32 %v2170_v5, %v1171_v3  ;;  %v1169_v12 = vld [vmem:[#allocation2 + $0xc0] sm:$0xff]  ;;  %1108 = vst.msk [vmem:[#allocation2 + $0xf0] sm:$0xff] %vm275_vm0, %v1043_v61  ;;  %v1044_v14 = vadd.f32 %v1609_v8, %v371_v59  ;;  %v1076_v15 = vadd.f32 %v1641_v9, %v403_v60  ;;  %v873_v16 = vpop.f32.mrb[31].mxu0  ;;  %v1001_v17 = vpop.f32.mrb[31].mxu1 }
 0x163   : > { %v1274_v11 = vadd.f32 %v2170_v5, %v1203_v4  ;;  %v1201_v13 = vld [vmem:[#allocation2 + $0x1c0] sm:$0xff]  ;;  %1140 = vst.msk [vmem:[#allocation2 + $0x1f0] sm:$0xff] %vm275_vm0, %v1075_v62  ;;  %v1240_v18 = vadd.f32 %v2170_v5, %v1169_v12  ;;  %1106 = vst.msk [vmem:[#allocation2 + $0xe0] sm:$0xff] %vm275_vm0, %v1041_v6  ;;  %v1042_v22 = vadd.f32 %v873_v16, %v369_v1 }
 0x164   : > { %v1272_v19 = vadd.f32 %v2170_v5, %v1201_v13  ;;  %v1172_v20 = vld [vmem:[#allocation2 + $0xd8] sm:$0xff]  ;;  %1138 = vst.msk [vmem:[#allocation2 + $0x1e0] sm:$0xff] %vm275_vm0, %v1073_v7  ;;  %v1074_v23 = vadd.f32 %v1001_v17, %v401_v2  ;;  %1306 = vst.msk [vmem:[%s2175_s5 + $0xd0] sm:$0xff] %vm275_vm0, %v1242_v10 }
 0x165   : > { %v1204_v21 = vld [vmem:[#allocation2 + $0x1d8] sm:$0xff]  ;;  %1338 = vst.msk [vmem:[%s2175_s5 + $0x1d0] sm:$0xff] %vm275_vm0, %v1274_v11  ;;  %v1243_v24 = vadd.f32 %v2170_v5, %v1172_v20  ;;  %1109 = vst.msk [vmem:[#allocation2 + $0xf8] sm:$0xff] %vm275_vm0, %v1044_v14 }
 0x166   : > { %v1275_v25 = vadd.f32 %v2170_v5, %v1204_v21  ;;  %v1170_v26 = vld [vmem:[#allocation2 + $0xc8] sm:$0xff]  ;;  %1141 = vst.msk [vmem:[#allocation2 + $0x1f8] sm:$0xff] %vm275_vm0, %v1076_v15  ;;  %1304 = vst.msk [vmem:[%s2175_s5 + $0xc0] sm:$0xff] %vm275_vm0, %v1240_v18 }
 0x167   : > { %v1202_v27 = vld [vmem:[#allocation2 + $0x1c8] sm:$0xff]  ;;  %1336 = vst.msk [vmem:[%s2175_s5 + $0x1c0] sm:$0xff] %vm275_vm0, %v1272_v19  ;;  %v1241_v28 = vadd.f32 %v2170_v5, %v1170_v26  ;;  %1107 = vst.msk [vmem:[#allocation2 + $0xe8] sm:$0xff] %vm275_vm0, %v1042_v22 }
 0x168   : > { %v1273_v29 = vadd.f32 %v2170_v5, %v1202_v27  ;;  %1139 = vst.msk [vmem:[#allocation2 + $0x1e8] sm:$0xff] %vm275_vm0, %v1074_v23  ;;  %1307 = vst.msk [vmem:[%s2175_s5 + $0xd8] sm:$0xff] %vm275_vm0, %v1243_v24 }
 0x169   : > { %1339 = vst.msk [vmem:[%s2175_s5 + $0x1d8] sm:$0xff] %vm275_vm0, %v1275_v25  ;;  %1305 = vst.msk [vmem:[%s2175_s5 + $0xc8] sm:$0xff] %vm275_vm0, %v1241_v28  ;;  %v1175_v30 = vld [vmem:[#allocation2 + $0xf0] sm:$0xff] }
 0x16a   : > { %1337 = vst.msk [vmem:[%s2175_s5 + $0x1c8] sm:$0xff] %vm275_vm0, %v1273_v29  ;;  %v1207_v31 = vld [vmem:[#allocation2 + $0x1f0] sm:$0xff]  ;;  %v1246_v32 = vadd.f32 %v2170_v5, %v1175_v30  ;;  %v1173_v34 = vld [vmem:[#allocation2 + $0xe0] sm:$0xff] }
 0x16b   : > { %v1278_v33 = vadd.f32 %v2170_v5, %v1207_v31  ;;  %v1205_v35 = vld [vmem:[#allocation2 + $0x1e0] sm:$0xff]  ;;  %v1244_v36 = vadd.f32 %v2170_v5, %v1173_v34 }
 0x16c   : > { %v1276_v37 = vadd.f32 %v2170_v5, %v1205_v35  ;;  %v1176_v38 = vld [vmem:[#allocation2 + $0xf8] sm:$0xff]  ;;  %1310 = vst.msk [vmem:[%s2175_s5 + $0xf0] sm:$0xff] %vm275_vm0, %v1246_v32 }
 0x16d   : > { %v1208_v39 = vld [vmem:[#allocation2 + $0x1f8] sm:$0xff]  ;;  %1342 = vst.msk [vmem:[%s2175_s5 + $0x1f0] sm:$0xff] %vm275_vm0, %v1278_v33  ;;  %v1247_v40 = vadd.f32 %v2170_v5, %v1176_v38  ;;  %1308 = vst.msk [vmem:[%s2175_s5 + $0xe0] sm:$0xff] %vm275_vm0, %v1244_v36 }
 0x16e   : > { %v1279_v41 = vadd.f32 %v2170_v5, %v1208_v39  ;;  %v1174_v42 = vld [vmem:[#allocation2 + $0xe8] sm:$0xff]  ;;  %1340 = vst.msk [vmem:[%s2175_s5 + $0x1e0] sm:$0xff] %vm275_vm0, %v1276_v37 }
 0x16f   : > { %v1206_v43 = vld [vmem:[#allocation2 + $0x1e8] sm:$0xff]  ;;  %v1245_v44 = vadd.f32 %v2170_v5, %v1174_v42  ;;  %1311 = vst.msk [vmem:[%s2175_s5 + $0xf8] sm:$0xff] %vm275_vm0, %v1247_v40 }
 0x170   : > { %v1277_v45 = vadd.f32 %v2170_v5, %v1206_v43  ;;  %1343 = vst.msk [vmem:[%s2175_s5 + $0x1f8] sm:$0xff] %vm275_vm0, %v1279_v41 }
 0x171   : > { %1309 = vst.msk [vmem:[%s2175_s5 + $0xe8] sm:$0xff] %vm275_vm0, %v1245_v44 }
 0x172   : > { %1341 = vst.msk [vmem:[%s2175_s5 + $0x1e8] sm:$0xff] %vm275_vm0, %v1277_v45 }
 0x173 PF: > { %s16_s17 = sadd.s32 1, %s1836_s17   ;;  %s2451_s12 = smov %s1820_s13 }
 0x174   : > { %p13_p9 = scmp.ge.s32.totalorder %s16_s17, 6   ;;  %s2452_s13 = smov %s1824_s14 }
 0x175   : > { %s2453_s14 = smov %s1911_s24  ;;  %s2454_s15 = smov %s1832_s16 }
 0x176   : > { %s2455_s16 = smov %s2457_s19  ;;  %15 = sbr.rel (!%p13_p9) target bundleno = 4 (0x4), region = 86 }
 0x17d   :  { %1372 = vsyncpa [#allocation4], 1 }
 0x17e   :  { %1374 = vsyncpa [#allocation4 + $0x1], 1 }

</bundles_post_ra>
